<compile_context>
chip_gen: v5e
topology: v5e:2x2
jax: 0.10.0
libtpu: 0.0.40
codegen_flags: <defaults>
</compile_context>

<pallas_src>
import jax
import jax.numpy as jnp
from jax.experimental import pallas as pl
from jax.experimental.pallas import tpu as pltpu


def _rnnlm_kernel(x_ref, w_in_ref, b_ref, wout_ref, bout_ref,
                  out_ref, h_scr, c_scr, hs_scr):
    # x_ref   : (BB, TT, E)   bf16 embedded tokens for this (batch, time) chunk
    # w_in_ref: (E+H, 4H)     bf16 fused [W_ih^T; W_hh^T]
    # b_ref   : (1, 4H)       f32  fused b_ih + b_hh
    # wout_ref: (H, V)        bf16 W_out^T
    # bout_ref: (1, V)        f32
    # out_ref : (BB, TT, V)   f32  log-probs
    # h_scr/c_scr: (BB, H)    f32  LSTM state carried across time chunks
    # hs_scr  : (BB, TT, H)   f32  hidden states staged for the chunk
    ti = pl.program_id(1)

    # PyTorch default h0 = c0 = 0 at the start of each batch tile's sequence.
    @pl.when(ti == 0)
    def _():
        h_scr[...] = jnp.zeros_like(h_scr)
        c_scr[...] = jnp.zeros_like(c_scr)

    BB, TT, _ = x_ref.shape
    H = h_scr.shape[-1]
    V = out_ref.shape[-1]

    # Hoist resident operands out of the unrolled loop.
    w_in = w_in_ref[...]                 # (E+H, 4H) bf16
    bias = b_ref[...]                    # (1, 4H)   f32

    h = h_scr[...]                       # (BB, H) f32
    c = c_scr[...]                       # (BB, H) f32

    # Statically unrolled recurrence over the TT-step chunk.
    for j in range(TT):
        x = x_ref[:, j, :]                                           # (BB, E) bf16
        xh = jnp.concatenate([x, h.astype(jnp.bfloat16)], axis=-1)   # (BB, E+H)
        gates = jnp.dot(xh, w_in, preferred_element_type=jnp.float32) + bias
        i_g = jax.nn.sigmoid(gates[:, 0 * H:1 * H])
        f_g = jax.nn.sigmoid(gates[:, 1 * H:2 * H])
        g_g = jnp.tanh(gates[:, 2 * H:3 * H])
        o_g = jax.nn.sigmoid(gates[:, 3 * H:4 * H])
        c = f_g * c + i_g * g_g
        h = o_g * jnp.tanh(c)
        hs_scr[:, j, :] = h

    # Persist LSTM state for the next time chunk.
    h_scr[...] = h
    c_scr[...] = c

    # Chunk-batched output projection (M = BB*TT rows) + log_softmax over V.
    hs2 = hs_scr[...].reshape(BB * TT, H).astype(jnp.bfloat16)
    logits = (jnp.dot(hs2, wout_ref[...], preferred_element_type=jnp.float32)
              + bout_ref[...])                                       # (BB*TT, V)
    m = jnp.max(logits, axis=-1, keepdims=True)
    shifted = logits - m
    lse = jnp.log(jnp.sum(jnp.exp(shifted), axis=-1, keepdims=True))
    out_ref[...] = (shifted - lse).reshape(BB, TT, V).astype(out_ref.dtype)


def rnnlm_forward(inputs, params, *, time_chunk=32):
    """inputs: (B, T) int32 token ids.  Returns (B, T, V) float32 log-probs."""
    emb = params["embedding"]          # (V, E)   f32
    w_in_t = params["w_in_t"]          # (E+H, 4H) bf16  = [W_ih^T; W_hh^T]
    b = params["bias"]                 # (1, 4H)  f32    = b_ih + b_hh
    w_out_t = params["w_out_t"]        # (H, V)   bf16
    b_out = params["b_out"]            # (1, V)   f32

    B, T = inputs.shape
    V, E = emb.shape
    H = w_out_t.shape[0]

    # Embedding lookup stays in XLA; cast to bf16 (MXU operand, half the HBM bytes).
    embeds = jnp.take(emb, inputs, axis=0).astype(jnp.bfloat16)      # (B, T, E)

    # Chunk sizes.  TT timesteps per grid step; batch split into (up to) two
    # tiles so both v7x TensorCores get independent work.
    TT = min(time_chunk, T)
    BB = max(1, pl.cdiv(B, 2))
    Tp = pl.cdiv(T, TT) * TT
    Bp = pl.cdiv(B, BB) * BB
    if (Bp, Tp) != (B, T):
        embeds = jnp.pad(embeds, ((0, Bp - B), (0, Tp - T), (0, 0)))

    grid = (Bp // BB, Tp // TT)

    out = pl.pallas_call(
        _rnnlm_kernel,
        out_shape=jax.ShapeDtypeStruct((Bp, Tp, V), jnp.float32),
        grid_spec=pltpu.PrefetchScalarGridSpec(
            num_scalar_prefetch=0,
            grid=grid,
            in_specs=[
                pl.BlockSpec((BB, TT, E), lambda bi, ti: (bi, ti, 0)),   # x chunk
                pl.BlockSpec((E + H, 4 * H), lambda bi, ti: (0, 0)),     # fused W (resident)
                pl.BlockSpec((1, 4 * H), lambda bi, ti: (0, 0)),         # bias
                pl.BlockSpec((H, V), lambda bi, ti: (0, 0)),             # W_out^T (resident)
                pl.BlockSpec((1, V), lambda bi, ti: (0, 0)),             # b_out
            ],
            out_specs=pl.BlockSpec((BB, TT, V), lambda bi, ti: (bi, ti, 0)),
            scratch_shapes=[
                pltpu.VMEM((BB, H), jnp.float32),        # h state (carried over T)
                pltpu.VMEM((BB, H), jnp.float32),        # c state (carried over T)
                pltpu.VMEM((BB, TT, H), jnp.float32),    # per-chunk hidden states
            ],
        ),
        compiler_params=pltpu.CompilerParams(
            # Batch tiles are independent (megacore on v7x); the time axis is a
            # sequential recurrence carried in scratch -> must stay "arbitrary".
            dimension_semantics=("parallel", "arbitrary"),
            # Headroom above the default scoped VMEM limit for larger TT/V tiles.
            vmem_limit_bytes=64 * 1024 * 1024,
        ),
    )(embeds, w_in_t, b, w_out_t, b_out)

    return out[:B, :T]


def rnnlm_reference(inputs, params):
    """Pure-JAX reference with the same bf16 matmul / f32 elementwise recipe."""
    emb = params["embedding"]
    w_in_t = params["w_in_t"]
    b = params["bias"]
    w_out_t = params["w_out_t"]
    b_out = params["b_out"]
    B, _ = inputs.shape
    H = w_out_t.shape[0]

    x = jnp.take(emb, inputs, axis=0).astype(jnp.bfloat16)          # (B, T, E)

    def step(carry, x_t):
        h, c = carry
        xh = jnp.concatenate([x_t, h.astype(jnp.bfloat16)], axis=-1)
        gates = jnp.dot(xh, w_in_t, preferred_element_type=jnp.float32) + b
        i_g = jax.nn.sigmoid(gates[:, 0 * H:1 * H])
        f_g = jax.nn.sigmoid(gates[:, 1 * H:2 * H])
        g_g = jnp.tanh(gates[:, 2 * H:3 * H])
        o_g = jax.nn.sigmoid(gates[:, 3 * H:4 * H])
        c = f_g * c + i_g * g_g
        h = o_g * jnp.tanh(c)
        return (h, c), h

    init = (jnp.zeros((B, H), jnp.float32), jnp.zeros((B, H), jnp.float32))
    _, hs = jax.lax.scan(step, init, jnp.swapaxes(x, 0, 1))          # (T, B, H)
    hs = jnp.swapaxes(hs, 0, 1)                                      # (B, T, H)
    logits = (jnp.dot(hs.astype(jnp.bfloat16), w_out_t,
                      preferred_element_type=jnp.float32) + b_out)
    return jax.nn.log_softmax(logits, axis=-1)


def init_params(key, vocab_size, embedding_dim, hidden_dim):
    ks = jax.random.split(key, 7)
    scale = 0.1
    emb = scale * jax.random.normal(ks[0], (vocab_size, embedding_dim), jnp.float32)
    # PyTorch LSTM gate order: i, f, g, o (rows of weight_ih / weight_hh).
    w_ih = scale * jax.random.normal(ks[1], (4 * hidden_dim, embedding_dim), jnp.float32)
    w_hh = scale * jax.random.normal(ks[2], (4 * hidden_dim, hidden_dim), jnp.float32)
    b_ih = scale * jax.random.normal(ks[3], (4 * hidden_dim,), jnp.float32)
    b_hh = scale * jax.random.normal(ks[4], (4 * hidden_dim,), jnp.float32)
    w_out = scale * jax.random.normal(ks[5], (vocab_size, hidden_dim), jnp.float32)
    b_out = scale * jax.random.normal(ks[6], (vocab_size,), jnp.float32)
    # Fuse the two gate weights: [W_ih^T; W_hh^T] -> (E+H, 4H), bf16 MXU operand.
    w_in_t = jnp.concatenate([w_ih.T, w_hh.T], axis=0)
    return {
        "embedding": emb,
        "w_in_t": w_in_t.astype(jnp.bfloat16),            # (E+H, 4H)
        "bias": (b_ih + b_hh).reshape(1, -1),              # (1, 4H)  f32
        "w_out_t": w_out.T.astype(jnp.bfloat16),           # (H, V)
        "b_out": b_out.reshape(1, -1),                     # (1, V)   f32
    }


if __name__ == "__main__":
    vocab_size, embedding_dim, hidden_dim = 128, 32, 32
    batch, seq = 2, 8

    key = jax.random.PRNGKey(0)
    k_param, k_tok = jax.random.split(key)
    params = init_params(k_param, vocab_size, embedding_dim, hidden_dim)
    tokens = jax.random.randint(k_tok, (batch, seq), 0, vocab_size, dtype=jnp.int32)

    log_probs = jax.block_until_ready(rnnlm_forward(tokens, params))
    assert log_probs.shape == (batch, seq, vocab_size)

    # log_softmax rows must (approximately) sum to 1 in prob space.
    row_sums = jnp.exp(log_probs).sum(-1)
    assert bool(jnp.all(jnp.abs(row_sums - 1.0) < 1e-4))

    # Match the pure-JAX reference (same bf16/f32 recipe).
    ref = jax.block_until_ready(rnnlm_reference(tokens, params))
    assert bool(jnp.max(jnp.abs(log_probs - ref)) < 1e-3)

    print("KERNEL_OK")
</pallas_src>

<mosaic_0001>
module attributes {stable_mosaic.version = 11 : i64} {
  func.func @_rnnlm_kernel(%arg0: i32, %arg1: i32, %arg2: memref<1x8x32xbf16, #tpu.memory_space<vmem>>, %arg3: memref<64x128xbf16, #tpu.memory_space<vmem>>, %arg4: memref<1x128xf32, #tpu.memory_space<vmem>>, %arg5: memref<32x128xbf16, #tpu.memory_space<vmem>>, %arg6: memref<1x128xf32, #tpu.memory_space<vmem>>, %arg7: memref<1x8x128xf32, #tpu.memory_space<vmem>>, %arg8: memref<1x32xf32, #tpu.memory_space<vmem>>, %arg9: memref<1x32xf32, #tpu.memory_space<vmem>>, %arg10: memref<1x8x32xf32, #tpu.memory_space<vmem>>) attributes {dimension_semantics = [#tpu.dimension_semantics<parallel>, #tpu.dimension_semantics<arbitrary>], iteration_bounds = array<i64: 2, 1>, scalar_prefetch = 0 : i64, scratch_operands = 3 : i64, tpu.core_type = #tpu.core_type<tc>, window_params = [{transform_indices = @transform_0, window_bounds = array<i64: 1, 8, 32>}, {pipeline_mode = #tpu.pipeline_mode<synchronous>, transform_indices = @transform_1, window_bounds = array<i64: 64, 128>}, {pipeline_mode = #tpu.pipeline_mode<synchronous>, transform_indices = @transform_2, window_bounds = array<i64: 1, 128>}, {pipeline_mode = #tpu.pipeline_mode<synchronous>, transform_indices = @transform_3, window_bounds = array<i64: 32, 128>}, {pipeline_mode = #tpu.pipeline_mode<synchronous>, transform_indices = @transform_4, window_bounds = array<i64: 1, 128>}, {transform_indices = @transform_5, window_bounds = array<i64: 1, 8, 128>}]} {
    %c0_i32 = arith.constant 0 : i32
    %0 = arith.cmpi eq, %arg1, %c0_i32 : i32
    %1 = arith.extui %0 : i1 to i32
    %c0_i32_0 = arith.constant 0 : i32
    %2 = arith.cmpi ne, %1, %c0_i32_0 : i32
    scf.if %2 {
      %cst_97 = arith.constant 0.000000e+00 : f32
      %301 = vector.broadcast %cst_97 : f32 to vector<1x32xf32>
      %c0_98 = arith.constant 0 : index
      %c0_99 = arith.constant 0 : index
      %302 = vector.load %arg8[%c0_98, %c0_99] : memref<1x32xf32, #tpu.memory_space<vmem>>, vector<1x32xf32>
      tpu.vector_store %arg8[%c0_98, %c0_99], %301 {strides = array<i32>} : memref<1x32xf32, #tpu.memory_space<vmem>>, vector<1x32xf32>,
      %cst_100 = arith.constant 0.000000e+00 : f32
      %303 = vector.broadcast %cst_100 : f32 to vector<1x32xf32>
      %c0_101 = arith.constant 0 : index
      %c0_102 = arith.constant 0 : index
      %304 = vector.load %arg9[%c0_101, %c0_102] : memref<1x32xf32, #tpu.memory_space<vmem>>, vector<1x32xf32>
      tpu.vector_store %arg9[%c0_101, %c0_102], %303 {strides = array<i32>} : memref<1x32xf32, #tpu.memory_space<vmem>>, vector<1x32xf32>,
    } else {
    }
    %c0 = arith.constant 0 : index
    %c0_1 = arith.constant 0 : index
    %3 = vector.load %arg3[%c0, %c0_1] : memref<64x128xbf16, #tpu.memory_space<vmem>>, vector<64x128xbf16>
    %c0_2 = arith.constant 0 : index
    %c0_3 = arith.constant 0 : index
    %4 = vector.load %arg4[%c0_2, %c0_3] : memref<1x128xf32, #tpu.memory_space<vmem>>, vector<1x128xf32>
    %c0_4 = arith.constant 0 : index
    %c0_5 = arith.constant 0 : index
    %5 = vector.load %arg8[%c0_4, %c0_5] : memref<1x32xf32, #tpu.memory_space<vmem>>, vector<1x32xf32>
    %c0_6 = arith.constant 0 : index
    %c0_7 = arith.constant 0 : index
    %6 = vector.load %arg9[%c0_6, %c0_7] : memref<1x32xf32, #tpu.memory_space<vmem>>, vector<1x32xf32>
    %c0_8 = arith.constant 0 : index
    %c0_9 = arith.constant 0 : index
    %c0_10 = arith.constant 0 : index
    %7 = vector.load %arg2[%c0_8, %c0_9, %c0_10] : memref<1x8x32xbf16, #tpu.memory_space<vmem>>, vector<1x1x32xbf16>
    %8 = vector.shape_cast %7 : vector<1x1x32xbf16> to vector<1x32xbf16>
    %9 = arith.truncf %5 : vector<1x32xf32> to vector<1x32xbf16>
    %10 = tpu.concatenate %8, %9 in 1 : vector<1x32xbf16>, vector<1x32xbf16> -> vector<1x64xbf16>
    %cst = arith.constant dense<0.000000e+00> : vector<1x128xf32>
    %11 = tpu.matmul %10, %3, %cst {dimension_numbers = #tpu.dot_dimension_numbers<[1], [0], [0], [1], [0, 0, 1, 1], [], []>} : vector<1x64xbf16>, vector<64x128xbf16>, vector<1x128xf32> -> vector<1x128xf32>
    %12 = arith.addf %11, %4 : vector<1x128xf32>
    %13 = vector.extract_strided_slice %12 {offsets = [0, 0], sizes = [1, 32], strides = [1, 1]} : vector<1x128xf32> to vector<1x32xf32>
    %14 = arith.negf %13 : vector<1x32xf32>
    %15 = math.exp %14 : vector<1x32xf32>
    %cst_11 = arith.constant 1.000000e+00 : f32
    %16 = vector.broadcast %cst_11 : f32 to vector<1x32xf32>
    %17 = arith.addf %16, %15 : vector<1x32xf32>
    %18 = arith.divf %16, %17 : vector<1x32xf32>
    %19 = vector.extract_strided_slice %12 {offsets = [0, 32], sizes = [1, 32], strides = [1, 1]} : vector<1x128xf32> to vector<1x32xf32>
    %20 = arith.negf %19 : vector<1x32xf32>
    %21 = math.exp %20 : vector<1x32xf32>
    %cst_12 = arith.constant 1.000000e+00 : f32
    %22 = vector.broadcast %cst_12 : f32 to vector<1x32xf32>
    %23 = arith.addf %22, %21 : vector<1x32xf32>
    %24 = arith.divf %22, %23 : vector<1x32xf32>
    %25 = vector.extract_strided_slice %12 {offsets = [0, 64], sizes = [1, 32], strides = [1, 1]} : vector<1x128xf32> to vector<1x32xf32>
    %26 = math.tanh %25 : vector<1x32xf32>
    %27 = vector.extract_strided_slice %12 {offsets = [0, 96], sizes = [1, 32], strides = [1, 1]} : vector<1x128xf32> to vector<1x32xf32>
    %28 = arith.negf %27 : vector<1x32xf32>
    %29 = math.exp %28 : vector<1x32xf32>
    %cst_13 = arith.constant 1.000000e+00 : f32
    %30 = vector.broadcast %cst_13 : f32 to vector<1x32xf32>
    %31 = arith.addf %30, %29 : vector<1x32xf32>
    %32 = arith.divf %30, %31 : vector<1x32xf32>
    %33 = arith.mulf %24, %6 : vector<1x32xf32>
    %34 = arith.mulf %18, %26 : vector<1x32xf32>
    %35 = arith.addf %33, %34 : vector<1x32xf32>
    %36 = math.tanh %35 : vector<1x32xf32>
    %37 = arith.mulf %32, %36 : vector<1x32xf32>
    %c0_14 = arith.constant 0 : index
    %c0_15 = arith.constant 0 : index
    %c0_16 = arith.constant 0 : index
    %38 = vector.load %arg10[%c0_14, %c0_15, %c0_16] : memref<1x8x32xf32, #tpu.memory_space<vmem>>, vector<1x1x32xf32>
    %39 = vector.shape_cast %38 : vector<1x1x32xf32> to vector<1x32xf32>
    %40 = vector.shape_cast %37 : vector<1x32xf32> to vector<1x1x32xf32>
    tpu.vector_store %arg10[%c0_14, %c0_15, %c0_16], %40 {strides = array<i32>} : memref<1x8x32xf32, #tpu.memory_space<vmem>>, vector<1x1x32xf32>,
    %c0_17 = arith.constant 0 : index
    %c1 = arith.constant 1 : index
    %c0_18 = arith.constant 0 : index
    %41 = vector.load %arg2[%c0_17, %c1, %c0_18] : memref<1x8x32xbf16, #tpu.memory_space<vmem>>, vector<1x1x32xbf16>
    %42 = vector.shape_cast %41 : vector<1x1x32xbf16> to vector<1x32xbf16>
    %43 = arith.truncf %37 : vector<1x32xf32> to vector<1x32xbf16>
    %44 = tpu.concatenate %42, %43 in 1 : vector<1x32xbf16>, vector<1x32xbf16> -> vector<1x64xbf16>
    %cst_19 = arith.constant dense<0.000000e+00> : vector<1x128xf32>
    %45 = tpu.matmul %44, %3, %cst_19 {dimension_numbers = #tpu.dot_dimension_numbers<[1], [0], [0], [1], [0, 0, 1, 1], [], []>} : vector<1x64xbf16>, vector<64x128xbf16>, vector<1x128xf32> -> vector<1x128xf32>
    %46 = arith.addf %45, %4 : vector<1x128xf32>
    %47 = vector.extract_strided_slice %46 {offsets = [0, 0], sizes = [1, 32], strides = [1, 1]} : vector<1x128xf32> to vector<1x32xf32>
    %48 = arith.negf %47 : vector<1x32xf32>
    %49 = math.exp %48 : vector<1x32xf32>
    %cst_20 = arith.constant 1.000000e+00 : f32
    %50 = vector.broadcast %cst_20 : f32 to vector<1x32xf32>
    %51 = arith.addf %50, %49 : vector<1x32xf32>
    %52 = arith.divf %50, %51 : vector<1x32xf32>
    %53 = vector.extract_strided_slice %46 {offsets = [0, 32], sizes = [1, 32], strides = [1, 1]} : vector<1x128xf32> to vector<1x32xf32>
    %54 = arith.negf %53 : vector<1x32xf32>
    %55 = math.exp %54 : vector<1x32xf32>
    %cst_21 = arith.constant 1.000000e+00 : f32
    %56 = vector.broadcast %cst_21 : f32 to vector<1x32xf32>
    %57 = arith.addf %56, %55 : vector<1x32xf32>
    %58 = arith.divf %56, %57 : vector<1x32xf32>
    %59 = vector.extract_strided_slice %46 {offsets = [0, 64], sizes = [1, 32], strides = [1, 1]} : vector<1x128xf32> to vector<1x32xf32>
    %60 = math.tanh %59 : vector<1x32xf32>
    %61 = vector.extract_strided_slice %46 {offsets = [0, 96], sizes = [1, 32], strides = [1, 1]} : vector<1x128xf32> to vector<1x32xf32>
    %62 = arith.negf %61 : vector<1x32xf32>
    %63 = math.exp %62 : vector<1x32xf32>
    %cst_22 = arith.constant 1.000000e+00 : f32
    %64 = vector.broadcast %cst_22 : f32 to vector<1x32xf32>
    %65 = arith.addf %64, %63 : vector<1x32xf32>
    %66 = arith.divf %64, %65 : vector<1x32xf32>
    %67 = arith.mulf %58, %35 : vector<1x32xf32>
    %68 = arith.mulf %52, %60 : vector<1x32xf32>
    %69 = arith.addf %67, %68 : vector<1x32xf32>
    %70 = math.tanh %69 : vector<1x32xf32>
    %71 = arith.mulf %66, %70 : vector<1x32xf32>
    %c0_23 = arith.constant 0 : index
    %c1_24 = arith.constant 1 : index
    %c0_25 = arith.constant 0 : index
    %72 = vector.load %arg10[%c0_23, %c1_24, %c0_25] : memref<1x8x32xf32, #tpu.memory_space<vmem>>, vector<1x1x32xf32>
    %73 = vector.shape_cast %72 : vector<1x1x32xf32> to vector<1x32xf32>
    %74 = vector.shape_cast %71 : vector<1x32xf32> to vector<1x1x32xf32>
    tpu.vector_store %arg10[%c0_23, %c1_24, %c0_25], %74 {strides = array<i32>} : memref<1x8x32xf32, #tpu.memory_space<vmem>>, vector<1x1x32xf32>,
    %c0_26 = arith.constant 0 : index
    %c2 = arith.constant 2 : index
    %c0_27 = arith.constant 0 : index
    %75 = vector.load %arg2[%c0_26, %c2, %c0_27] : memref<1x8x32xbf16, #tpu.memory_space<vmem>>, vector<1x1x32xbf16>
    %76 = vector.shape_cast %75 : vector<1x1x32xbf16> to vector<1x32xbf16>
    %77 = arith.truncf %71 : vector<1x32xf32> to vector<1x32xbf16>
    %78 = tpu.concatenate %76, %77 in 1 : vector<1x32xbf16>, vector<1x32xbf16> -> vector<1x64xbf16>
    %cst_28 = arith.constant dense<0.000000e+00> : vector<1x128xf32>
    %79 = tpu.matmul %78, %3, %cst_28 {dimension_numbers = #tpu.dot_dimension_numbers<[1], [0], [0], [1], [0, 0, 1, 1], [], []>} : vector<1x64xbf16>, vector<64x128xbf16>, vector<1x128xf32> -> vector<1x128xf32>
    %80 = arith.addf %79, %4 : vector<1x128xf32>
    %81 = vector.extract_strided_slice %80 {offsets = [0, 0], sizes = [1, 32], strides = [1, 1]} : vector<1x128xf32> to vector<1x32xf32>
    %82 = arith.negf %81 : vector<1x32xf32>
    %83 = math.exp %82 : vector<1x32xf32>
    %cst_29 = arith.constant 1.000000e+00 : f32
    %84 = vector.broadcast %cst_29 : f32 to vector<1x32xf32>
    %85 = arith.addf %84, %83 : vector<1x32xf32>
    %86 = arith.divf %84, %85 : vector<1x32xf32>
    %87 = vector.extract_strided_slice %80 {offsets = [0, 32], sizes = [1, 32], strides = [1, 1]} : vector<1x128xf32> to vector<1x32xf32>
    %88 = arith.negf %87 : vector<1x32xf32>
    %89 = math.exp %88 : vector<1x32xf32>
    %cst_30 = arith.constant 1.000000e+00 : f32
    %90 = vector.broadcast %cst_30 : f32 to vector<1x32xf32>
    %91 = arith.addf %90, %89 : vector<1x32xf32>
    %92 = arith.divf %90, %91 : vector<1x32xf32>
    %93 = vector.extract_strided_slice %80 {offsets = [0, 64], sizes = [1, 32], strides = [1, 1]} : vector<1x128xf32> to vector<1x32xf32>
    %94 = math.tanh %93 : vector<1x32xf32>
    %95 = vector.extract_strided_slice %80 {offsets = [0, 96], sizes = [1, 32], strides = [1, 1]} : vector<1x128xf32> to vector<1x32xf32>
    %96 = arith.negf %95 : vector<1x32xf32>
    %97 = math.exp %96 : vector<1x32xf32>
    %cst_31 = arith.constant 1.000000e+00 : f32
    %98 = vector.broadcast %cst_31 : f32 to vector<1x32xf32>
    %99 = arith.addf %98, %97 : vector<1x32xf32>
    %100 = arith.divf %98, %99 : vector<1x32xf32>
    %101 = arith.mulf %92, %69 : vector<1x32xf32>
    %102 = arith.mulf %86, %94 : vector<1x32xf32>
    %103 = arith.addf %101, %102 : vector<1x32xf32>
    %104 = math.tanh %103 : vector<1x32xf32>
    %105 = arith.mulf %100, %104 : vector<1x32xf32>
    %c0_32 = arith.constant 0 : index
    %c2_33 = arith.constant 2 : index
    %c0_34 = arith.constant 0 : index
    %106 = vector.load %arg10[%c0_32, %c2_33, %c0_34] : memref<1x8x32xf32, #tpu.memory_space<vmem>>, vector<1x1x32xf32>
    %107 = vector.shape_cast %106 : vector<1x1x32xf32> to vector<1x32xf32>
    %108 = vector.shape_cast %105 : vector<1x32xf32> to vector<1x1x32xf32>
    tpu.vector_store %arg10[%c0_32, %c2_33, %c0_34], %108 {strides = array<i32>} : memref<1x8x32xf32, #tpu.memory_space<vmem>>, vector<1x1x32xf32>,
    %c0_35 = arith.constant 0 : index
    %c3 = arith.constant 3 : index
    %c0_36 = arith.constant 0 : index
    %109 = vector.load %arg2[%c0_35, %c3, %c0_36] : memref<1x8x32xbf16, #tpu.memory_space<vmem>>, vector<1x1x32xbf16>
    %110 = vector.shape_cast %109 : vector<1x1x32xbf16> to vector<1x32xbf16>
    %111 = arith.truncf %105 : vector<1x32xf32> to vector<1x32xbf16>
    %112 = tpu.concatenate %110, %111 in 1 : vector<1x32xbf16>, vector<1x32xbf16> -> vector<1x64xbf16>
    %cst_37 = arith.constant dense<0.000000e+00> : vector<1x128xf32>
    %113 = tpu.matmul %112, %3, %cst_37 {dimension_numbers = #tpu.dot_dimension_numbers<[1], [0], [0], [1], [0, 0, 1, 1], [], []>} : vector<1x64xbf16>, vector<64x128xbf16>, vector<1x128xf32> -> vector<1x128xf32>
    %114 = arith.addf %113, %4 : vector<1x128xf32>
    %115 = vector.extract_strided_slice %114 {offsets = [0, 0], sizes = [1, 32], strides = [1, 1]} : vector<1x128xf32> to vector<1x32xf32>
    %116 = arith.negf %115 : vector<1x32xf32>
    %117 = math.exp %116 : vector<1x32xf32>
    %cst_38 = arith.constant 1.000000e+00 : f32
    %118 = vector.broadcast %cst_38 : f32 to vector<1x32xf32>
    %119 = arith.addf %118, %117 : vector<1x32xf32>
    %120 = arith.divf %118, %119 : vector<1x32xf32>
    %121 = vector.extract_strided_slice %114 {offsets = [0, 32], sizes = [1, 32], strides = [1, 1]} : vector<1x128xf32> to vector<1x32xf32>
    %122 = arith.negf %121 : vector<1x32xf32>
    %123 = math.exp %122 : vector<1x32xf32>
    %cst_39 = arith.constant 1.000000e+00 : f32
    %124 = vector.broadcast %cst_39 : f32 to vector<1x32xf32>
    %125 = arith.addf %124, %123 : vector<1x32xf32>
    %126 = arith.divf %124, %125 : vector<1x32xf32>
    %127 = vector.extract_strided_slice %114 {offsets = [0, 64], sizes = [1, 32], strides = [1, 1]} : vector<1x128xf32> to vector<1x32xf32>
    %128 = math.tanh %127 : vector<1x32xf32>
    %129 = vector.extract_strided_slice %114 {offsets = [0, 96], sizes = [1, 32], strides = [1, 1]} : vector<1x128xf32> to vector<1x32xf32>
    %130 = arith.negf %129 : vector<1x32xf32>
    %131 = math.exp %130 : vector<1x32xf32>
    %cst_40 = arith.constant 1.000000e+00 : f32
    %132 = vector.broadcast %cst_40 : f32 to vector<1x32xf32>
    %133 = arith.addf %132, %131 : vector<1x32xf32>
    %134 = arith.divf %132, %133 : vector<1x32xf32>
    %135 = arith.mulf %126, %103 : vector<1x32xf32>
    %136 = arith.mulf %120, %128 : vector<1x32xf32>
    %137 = arith.addf %135, %136 : vector<1x32xf32>
    %138 = math.tanh %137 : vector<1x32xf32>
    %139 = arith.mulf %134, %138 : vector<1x32xf32>
    %c0_41 = arith.constant 0 : index
    %c3_42 = arith.constant 3 : index
    %c0_43 = arith.constant 0 : index
    %140 = vector.load %arg10[%c0_41, %c3_42, %c0_43] : memref<1x8x32xf32, #tpu.memory_space<vmem>>, vector<1x1x32xf32>
    %141 = vector.shape_cast %140 : vector<1x1x32xf32> to vector<1x32xf32>
    %142 = vector.shape_cast %139 : vector<1x32xf32> to vector<1x1x32xf32>
    tpu.vector_store %arg10[%c0_41, %c3_42, %c0_43], %142 {strides = array<i32>} : memref<1x8x32xf32, #tpu.memory_space<vmem>>, vector<1x1x32xf32>,
    %c0_44 = arith.constant 0 : index
    %c4 = arith.constant 4 : index
    %c0_45 = arith.constant 0 : index
    %143 = vector.load %arg2[%c0_44, %c4, %c0_45] : memref<1x8x32xbf16, #tpu.memory_space<vmem>>, vector<1x1x32xbf16>
    %144 = vector.shape_cast %143 : vector<1x1x32xbf16> to vector<1x32xbf16>
    %145 = arith.truncf %139 : vector<1x32xf32> to vector<1x32xbf16>
    %146 = tpu.concatenate %144, %145 in 1 : vector<1x32xbf16>, vector<1x32xbf16> -> vector<1x64xbf16>
    %cst_46 = arith.constant dense<0.000000e+00> : vector<1x128xf32>
    %147 = tpu.matmul %146, %3, %cst_46 {dimension_numbers = #tpu.dot_dimension_numbers<[1], [0], [0], [1], [0, 0, 1, 1], [], []>} : vector<1x64xbf16>, vector<64x128xbf16>, vector<1x128xf32> -> vector<1x128xf32>
    %148 = arith.addf %147, %4 : vector<1x128xf32>
    %149 = vector.extract_strided_slice %148 {offsets = [0, 0], sizes = [1, 32], strides = [1, 1]} : vector<1x128xf32> to vector<1x32xf32>
    %150 = arith.negf %149 : vector<1x32xf32>
    %151 = math.exp %150 : vector<1x32xf32>
    %cst_47 = arith.constant 1.000000e+00 : f32
    %152 = vector.broadcast %cst_47 : f32 to vector<1x32xf32>
    %153 = arith.addf %152, %151 : vector<1x32xf32>
    %154 = arith.divf %152, %153 : vector<1x32xf32>
    %155 = vector.extract_strided_slice %148 {offsets = [0, 32], sizes = [1, 32], strides = [1, 1]} : vector<1x128xf32> to vector<1x32xf32>
    %156 = arith.negf %155 : vector<1x32xf32>
    %157 = math.exp %156 : vector<1x32xf32>
    %cst_48 = arith.constant 1.000000e+00 : f32
    %158 = vector.broadcast %cst_48 : f32 to vector<1x32xf32>
    %159 = arith.addf %158, %157 : vector<1x32xf32>
    %160 = arith.divf %158, %159 : vector<1x32xf32>
    %161 = vector.extract_strided_slice %148 {offsets = [0, 64], sizes = [1, 32], strides = [1, 1]} : vector<1x128xf32> to vector<1x32xf32>
    %162 = math.tanh %161 : vector<1x32xf32>
    %163 = vector.extract_strided_slice %148 {offsets = [0, 96], sizes = [1, 32], strides = [1, 1]} : vector<1x128xf32> to vector<1x32xf32>
    %164 = arith.negf %163 : vector<1x32xf32>
    %165 = math.exp %164 : vector<1x32xf32>
    %cst_49 = arith.constant 1.000000e+00 : f32
    %166 = vector.broadcast %cst_49 : f32 to vector<1x32xf32>
    %167 = arith.addf %166, %165 : vector<1x32xf32>
    %168 = arith.divf %166, %167 : vector<1x32xf32>
    %169 = arith.mulf %160, %137 : vector<1x32xf32>
    %170 = arith.mulf %154, %162 : vector<1x32xf32>
    %171 = arith.addf %169, %170 : vector<1x32xf32>
    %172 = math.tanh %171 : vector<1x32xf32>
    %173 = arith.mulf %168, %172 : vector<1x32xf32>
    %c0_50 = arith.constant 0 : index
    %c4_51 = arith.constant 4 : index
    %c0_52 = arith.constant 0 : index
    %174 = vector.load %arg10[%c0_50, %c4_51, %c0_52] : memref<1x8x32xf32, #tpu.memory_space<vmem>>, vector<1x1x32xf32>
    %175 = vector.shape_cast %174 : vector<1x1x32xf32> to vector<1x32xf32>
    %176 = vector.shape_cast %173 : vector<1x32xf32> to vector<1x1x32xf32>
    tpu.vector_store %arg10[%c0_50, %c4_51, %c0_52], %176 {strides = array<i32>} : memref<1x8x32xf32, #tpu.memory_space<vmem>>, vector<1x1x32xf32>,
    %c0_53 = arith.constant 0 : index
    %c5 = arith.constant 5 : index
    %c0_54 = arith.constant 0 : index
    %177 = vector.load %arg2[%c0_53, %c5, %c0_54] : memref<1x8x32xbf16, #tpu.memory_space<vmem>>, vector<1x1x32xbf16>
    %178 = vector.shape_cast %177 : vector<1x1x32xbf16> to vector<1x32xbf16>
    %179 = arith.truncf %173 : vector<1x32xf32> to vector<1x32xbf16>
    %180 = tpu.concatenate %178, %179 in 1 : vector<1x32xbf16>, vector<1x32xbf16> -> vector<1x64xbf16>
    %cst_55 = arith.constant dense<0.000000e+00> : vector<1x128xf32>
    %181 = tpu.matmul %180, %3, %cst_55 {dimension_numbers = #tpu.dot_dimension_numbers<[1], [0], [0], [1], [0, 0, 1, 1], [], []>} : vector<1x64xbf16>, vector<64x128xbf16>, vector<1x128xf32> -> vector<1x128xf32>
    %182 = arith.addf %181, %4 : vector<1x128xf32>
    %183 = vector.extract_strided_slice %182 {offsets = [0, 0], sizes = [1, 32], strides = [1, 1]} : vector<1x128xf32> to vector<1x32xf32>
    %184 = arith.negf %183 : vector<1x32xf32>
    %185 = math.exp %184 : vector<1x32xf32>
    %cst_56 = arith.constant 1.000000e+00 : f32
    %186 = vector.broadcast %cst_56 : f32 to vector<1x32xf32>
    %187 = arith.addf %186, %185 : vector<1x32xf32>
    %188 = arith.divf %186, %187 : vector<1x32xf32>
    %189 = vector.extract_strided_slice %182 {offsets = [0, 32], sizes = [1, 32], strides = [1, 1]} : vector<1x128xf32> to vector<1x32xf32>
    %190 = arith.negf %189 : vector<1x32xf32>
    %191 = math.exp %190 : vector<1x32xf32>
    %cst_57 = arith.constant 1.000000e+00 : f32
    %192 = vector.broadcast %cst_57 : f32 to vector<1x32xf32>
    %193 = arith.addf %192, %191 : vector<1x32xf32>
    %194 = arith.divf %192, %193 : vector<1x32xf32>
    %195 = vector.extract_strided_slice %182 {offsets = [0, 64], sizes = [1, 32], strides = [1, 1]} : vector<1x128xf32> to vector<1x32xf32>
    %196 = math.tanh %195 : vector<1x32xf32>
    %197 = vector.extract_strided_slice %182 {offsets = [0, 96], sizes = [1, 32], strides = [1, 1]} : vector<1x128xf32> to vector<1x32xf32>
    %198 = arith.negf %197 : vector<1x32xf32>
    %199 = math.exp %198 : vector<1x32xf32>
    %cst_58 = arith.constant 1.000000e+00 : f32
    %200 = vector.broadcast %cst_58 : f32 to vector<1x32xf32>
    %201 = arith.addf %200, %199 : vector<1x32xf32>
    %202 = arith.divf %200, %201 : vector<1x32xf32>
    %203 = arith.mulf %194, %171 : vector<1x32xf32>
    %204 = arith.mulf %188, %196 : vector<1x32xf32>
    %205 = arith.addf %203, %204 : vector<1x32xf32>
    %206 = math.tanh %205 : vector<1x32xf32>
    %207 = arith.mulf %202, %206 : vector<1x32xf32>
    %c0_59 = arith.constant 0 : index
    %c5_60 = arith.constant 5 : index
    %c0_61 = arith.constant 0 : index
    %208 = vector.load %arg10[%c0_59, %c5_60, %c0_61] : memref<1x8x32xf32, #tpu.memory_space<vmem>>, vector<1x1x32xf32>
    %209 = vector.shape_cast %208 : vector<1x1x32xf32> to vector<1x32xf32>
    %210 = vector.shape_cast %207 : vector<1x32xf32> to vector<1x1x32xf32>
    tpu.vector_store %arg10[%c0_59, %c5_60, %c0_61], %210 {strides = array<i32>} : memref<1x8x32xf32, #tpu.memory_space<vmem>>, vector<1x1x32xf32>,
    %c0_62 = arith.constant 0 : index
    %c6 = arith.constant 6 : index
    %c0_63 = arith.constant 0 : index
    %211 = vector.load %arg2[%c0_62, %c6, %c0_63] : memref<1x8x32xbf16, #tpu.memory_space<vmem>>, vector<1x1x32xbf16>
    %212 = vector.shape_cast %211 : vector<1x1x32xbf16> to vector<1x32xbf16>
    %213 = arith.truncf %207 : vector<1x32xf32> to vector<1x32xbf16>
    %214 = tpu.concatenate %212, %213 in 1 : vector<1x32xbf16>, vector<1x32xbf16> -> vector<1x64xbf16>
    %cst_64 = arith.constant dense<0.000000e+00> : vector<1x128xf32>
    %215 = tpu.matmul %214, %3, %cst_64 {dimension_numbers = #tpu.dot_dimension_numbers<[1], [0], [0], [1], [0, 0, 1, 1], [], []>} : vector<1x64xbf16>, vector<64x128xbf16>, vector<1x128xf32> -> vector<1x128xf32>
    %216 = arith.addf %215, %4 : vector<1x128xf32>
    %217 = vector.extract_strided_slice %216 {offsets = [0, 0], sizes = [1, 32], strides = [1, 1]} : vector<1x128xf32> to vector<1x32xf32>
    %218 = arith.negf %217 : vector<1x32xf32>
    %219 = math.exp %218 : vector<1x32xf32>
    %cst_65 = arith.constant 1.000000e+00 : f32
    %220 = vector.broadcast %cst_65 : f32 to vector<1x32xf32>
    %221 = arith.addf %220, %219 : vector<1x32xf32>
    %222 = arith.divf %220, %221 : vector<1x32xf32>
    %223 = vector.extract_strided_slice %216 {offsets = [0, 32], sizes = [1, 32], strides = [1, 1]} : vector<1x128xf32> to vector<1x32xf32>
    %224 = arith.negf %223 : vector<1x32xf32>
    %225 = math.exp %224 : vector<1x32xf32>
    %cst_66 = arith.constant 1.000000e+00 : f32
    %226 = vector.broadcast %cst_66 : f32 to vector<1x32xf32>
    %227 = arith.addf %226, %225 : vector<1x32xf32>
    %228 = arith.divf %226, %227 : vector<1x32xf32>
    %229 = vector.extract_strided_slice %216 {offsets = [0, 64], sizes = [1, 32], strides = [1, 1]} : vector<1x128xf32> to vector<1x32xf32>
    %230 = math.tanh %229 : vector<1x32xf32>
    %231 = vector.extract_strided_slice %216 {offsets = [0, 96], sizes = [1, 32], strides = [1, 1]} : vector<1x128xf32> to vector<1x32xf32>
    %232 = arith.negf %231 : vector<1x32xf32>
    %233 = math.exp %232 : vector<1x32xf32>
    %cst_67 = arith.constant 1.000000e+00 : f32
    %234 = vector.broadcast %cst_67 : f32 to vector<1x32xf32>
    %235 = arith.addf %234, %233 : vector<1x32xf32>
    %236 = arith.divf %234, %235 : vector<1x32xf32>
    %237 = arith.mulf %228, %205 : vector<1x32xf32>
    %238 = arith.mulf %222, %230 : vector<1x32xf32>
    %239 = arith.addf %237, %238 : vector<1x32xf32>
    %240 = math.tanh %239 : vector<1x32xf32>
    %241 = arith.mulf %236, %240 : vector<1x32xf32>
    %c0_68 = arith.constant 0 : index
    %c6_69 = arith.constant 6 : index
    %c0_70 = arith.constant 0 : index
    %242 = vector.load %arg10[%c0_68, %c6_69, %c0_70] : memref<1x8x32xf32, #tpu.memory_space<vmem>>, vector<1x1x32xf32>
    %243 = vector.shape_cast %242 : vector<1x1x32xf32> to vector<1x32xf32>
    %244 = vector.shape_cast %241 : vector<1x32xf32> to vector<1x1x32xf32>
    tpu.vector_store %arg10[%c0_68, %c6_69, %c0_70], %244 {strides = array<i32>} : memref<1x8x32xf32, #tpu.memory_space<vmem>>, vector<1x1x32xf32>,
    %c0_71 = arith.constant 0 : index
    %c7 = arith.constant 7 : index
    %c0_72 = arith.constant 0 : index
    %245 = vector.load %arg2[%c0_71, %c7, %c0_72] : memref<1x8x32xbf16, #tpu.memory_space<vmem>>, vector<1x1x32xbf16>
    %246 = vector.shape_cast %245 : vector<1x1x32xbf16> to vector<1x32xbf16>
    %247 = arith.truncf %241 : vector<1x32xf32> to vector<1x32xbf16>
    %248 = tpu.concatenate %246, %247 in 1 : vector<1x32xbf16>, vector<1x32xbf16> -> vector<1x64xbf16>
    %cst_73 = arith.constant dense<0.000000e+00> : vector<1x128xf32>
    %249 = tpu.matmul %248, %3, %cst_73 {dimension_numbers = #tpu.dot_dimension_numbers<[1], [0], [0], [1], [0, 0, 1, 1], [], []>} : vector<1x64xbf16>, vector<64x128xbf16>, vector<1x128xf32> -> vector<1x128xf32>
    %250 = arith.addf %249, %4 : vector<1x128xf32>
    %251 = vector.extract_strided_slice %250 {offsets = [0, 0], sizes = [1, 32], strides = [1, 1]} : vector<1x128xf32> to vector<1x32xf32>
    %252 = arith.negf %251 : vector<1x32xf32>
    %253 = math.exp %252 : vector<1x32xf32>
    %cst_74 = arith.constant 1.000000e+00 : f32
    %254 = vector.broadcast %cst_74 : f32 to vector<1x32xf32>
    %255 = arith.addf %254, %253 : vector<1x32xf32>
    %256 = arith.divf %254, %255 : vector<1x32xf32>
    %257 = vector.extract_strided_slice %250 {offsets = [0, 32], sizes = [1, 32], strides = [1, 1]} : vector<1x128xf32> to vector<1x32xf32>
    %258 = arith.negf %257 : vector<1x32xf32>
    %259 = math.exp %258 : vector<1x32xf32>
    %cst_75 = arith.constant 1.000000e+00 : f32
    %260 = vector.broadcast %cst_75 : f32 to vector<1x32xf32>
    %261 = arith.addf %260, %259 : vector<1x32xf32>
    %262 = arith.divf %260, %261 : vector<1x32xf32>
    %263 = vector.extract_strided_slice %250 {offsets = [0, 64], sizes = [1, 32], strides = [1, 1]} : vector<1x128xf32> to vector<1x32xf32>
    %264 = math.tanh %263 : vector<1x32xf32>
    %265 = vector.extract_strided_slice %250 {offsets = [0, 96], sizes = [1, 32], strides = [1, 1]} : vector<1x128xf32> to vector<1x32xf32>
    %266 = arith.negf %265 : vector<1x32xf32>
    %267 = math.exp %266 : vector<1x32xf32>
    %cst_76 = arith.constant 1.000000e+00 : f32
    %268 = vector.broadcast %cst_76 : f32 to vector<1x32xf32>
    %269 = arith.addf %268, %267 : vector<1x32xf32>
    %270 = arith.divf %268, %269 : vector<1x32xf32>
    %271 = arith.mulf %262, %239 : vector<1x32xf32>
    %272 = arith.mulf %256, %264 : vector<1x32xf32>
    %273 = arith.addf %271, %272 : vector<1x32xf32>
    %274 = math.tanh %273 : vector<1x32xf32>
    %275 = arith.mulf %270, %274 : vector<1x32xf32>
    %c0_77 = arith.constant 0 : index
    %c7_78 = arith.constant 7 : index
    %c0_79 = arith.constant 0 : index
    %276 = vector.load %arg10[%c0_77, %c7_78, %c0_79] : memref<1x8x32xf32, #tpu.memory_space<vmem>>, vector<1x1x32xf32>
    %277 = vector.shape_cast %276 : vector<1x1x32xf32> to vector<1x32xf32>
    %278 = vector.shape_cast %275 : vector<1x32xf32> to vector<1x1x32xf32>
    tpu.vector_store %arg10[%c0_77, %c7_78, %c0_79], %278 {strides = array<i32>} : memref<1x8x32xf32, #tpu.memory_space<vmem>>, vector<1x1x32xf32>,
    %c0_80 = arith.constant 0 : index
    %c0_81 = arith.constant 0 : index
    %279 = vector.load %arg8[%c0_80, %c0_81] : memref<1x32xf32, #tpu.memory_space<vmem>>, vector<1x32xf32>
    tpu.vector_store %arg8[%c0_80, %c0_81], %275 {strides = array<i32>} : memref<1x32xf32, #tpu.memory_space<vmem>>, vector<1x32xf32>,
    %c0_82 = arith.constant 0 : index
    %c0_83 = arith.constant 0 : index
    %280 = vector.load %arg9[%c0_82, %c0_83] : memref<1x32xf32, #tpu.memory_space<vmem>>, vector<1x32xf32>
    tpu.vector_store %arg9[%c0_82, %c0_83], %273 {strides = array<i32>} : memref<1x32xf32, #tpu.memory_space<vmem>>, vector<1x32xf32>,
    %c0_84 = arith.constant 0 : index
    %c0_85 = arith.constant 0 : index
    %c0_86 = arith.constant 0 : index
    %281 = vector.load %arg10[%c0_84, %c0_85, %c0_86] : memref<1x8x32xf32, #tpu.memory_space<vmem>>, vector<1x8x32xf32>
    %282 = vector.shape_cast %281 : vector<1x8x32xf32> to vector<8x32xf32>
    %283 = arith.truncf %282 : vector<8x32xf32> to vector<8x32xbf16>
    %c0_87 = arith.constant 0 : index
    %c0_88 = arith.constant 0 : index
    %284 = vector.load %arg5[%c0_87, %c0_88] : memref<32x128xbf16, #tpu.memory_space<vmem>>, vector<32x128xbf16>
    %cst_89 = arith.constant dense<0.000000e+00> : vector<8x128xf32>
    %285 = tpu.matmul %283, %284, %cst_89 {dimension_numbers = #tpu.dot_dimension_numbers<[1], [0], [0], [1], [0, 0, 1, 1], [], []>} : vector<8x32xbf16>, vector<32x128xbf16>, vector<8x128xf32> -> vector<8x128xf32>
    %c0_90 = arith.constant 0 : index
    %c0_91 = arith.constant 0 : index
    %286 = vector.load %arg6[%c0_90, %c0_91] : memref<1x128xf32, #tpu.memory_space<vmem>>, vector<1x128xf32>
    %287 = vector.broadcast %286 : vector<1x128xf32> to vector<8x128xf32>
    %288 = arith.addf %285, %287 : vector<8x128xf32>
    %cst_92 = arith.constant dense<0xFF800000> : vector<8xf32>
    %289 = vector.multi_reduction <maximumf>, %288, %cst_92 [1] : vector<8x128xf32> to vector<8xf32>
    %290 = vector.shape_cast %289 : vector<8xf32> to vector<8x1xf32>
    %291 = vector.broadcast %290 : vector<8x1xf32> to vector<8x128xf32>
    %292 = arith.subf %288, %291 : vector<8x128xf32>
    %293 = math.exp %292 : vector<8x128xf32>
    %cst_93 = arith.constant dense<0.000000e+00> : vector<8xf32>
    %294 = vector.multi_reduction <add>, %293, %cst_93 [1] : vector<8x128xf32> to vector<8xf32>
    %295 = vector.shape_cast %294 : vector<8xf32> to vector<8x1xf32>
    %296 = math.log %295 : vector<8x1xf32>
    %297 = vector.broadcast %296 : vector<8x1xf32> to vector<8x128xf32>
    %298 = arith.subf %292, %297 : vector<8x128xf32>
    %299 = vector.shape_cast %298 : vector<8x128xf32> to vector<1x8x128xf32>
    %c0_94 = arith.constant 0 : index
    %c0_95 = arith.constant 0 : index
    %c0_96 = arith.constant 0 : index
    %300 = vector.load %arg7[%c0_94, %c0_95, %c0_96] : memref<1x8x128xf32, #tpu.memory_space<vmem>>, vector<1x8x128xf32>
    tpu.vector_store %arg7[%c0_94, %c0_95, %c0_96], %299 {strides = array<i32>} : memref<1x8x128xf32, #tpu.memory_space<vmem>>, vector<1x8x128xf32>,
    return
  }
  func.func @transform_0(%arg0: i32, %arg1: i32) -> (i32, i32, i32) {
    %c0_i32 = arith.constant 0 : i32
    %c0_i32_0 = arith.constant 0 : i32
    return %arg0, %arg1, %c0_i32 : i32, i32, i32
  }
  func.func @transform_1(%arg0: i32, %arg1: i32) -> (i32, i32) {
    %c0_i32 = arith.constant 0 : i32
    %c0_i32_0 = arith.constant 0 : i32
    %c0_i32_1 = arith.constant 0 : i32
    return %c0_i32, %c0_i32_0 : i32, i32
  }
  func.func @transform_2(%arg0: i32, %arg1: i32) -> (i32, i32) {
    %c0_i32 = arith.constant 0 : i32
    %c0_i32_0 = arith.constant 0 : i32
    %c0_i32_1 = arith.constant 0 : i32
    return %c0_i32, %c0_i32_0 : i32, i32
  }
  func.func @transform_3(%arg0: i32, %arg1: i32) -> (i32, i32) {
    %c0_i32 = arith.constant 0 : i32
    %c0_i32_0 = arith.constant 0 : i32
    %c0_i32_1 = arith.constant 0 : i32
    return %c0_i32, %c0_i32_0 : i32, i32
  }
  func.func @transform_4(%arg0: i32, %arg1: i32) -> (i32, i32) {
    %c0_i32 = arith.constant 0 : i32
    %c0_i32_0 = arith.constant 0 : i32
    %c0_i32_1 = arith.constant 0 : i32
    return %c0_i32, %c0_i32_0 : i32, i32
  }
  func.func @transform_5(%arg0: i32, %arg1: i32) -> (i32, i32, i32) {
    %c0_i32 = arith.constant 0 : i32
    %c0_i32_0 = arith.constant 0 : i32
    return %arg0, %arg1, %c0_i32 : i32, i32, i32
  }
}

</mosaic_0001>

<bundles_post_ra>
// kernel: tpu_custom_call.1
= control target key start
LH: loop header
LB: loop body
LE: loop exit
PB: predicated region body
PF: predicated region fallthrough
CT: control target
= control target key end

     0   :  { %10 = vsyncpa [#allocation6], 0  ;;  %s1802_s0 = inlined_call_operand.hbm [shape: bf16[2,8,32], index: 0, kind: input, shape index: {}]   ;;  %s1803_s1 = inlined_call_operand.hbm [shape: bf16[64,128], index: 1, kind: input, shape index: {}]   ;;  %s1804_s2 = inlined_call_operand.vmem [shape: f32[1,128], index: 2, kind: input, shape index: {}]   ;;  %s1805_s3 = inlined_call_operand.hbm [shape: bf16[32,128], index: 3, kind: input, shape index: {}]   ;;  %s1806_s4 = inlined_call_operand.vmem [shape: f32[1,128], index: 4, kind: input, shape index: {}]   ;;  %s1807_s5 = inlined_call_operand.hbm [shape: f32[2,8,128], index: 5, kind: output, shape index: {}]  }
   0x1   :  { %12 = vsyncpa [#allocation6 + $0x1], 0 }
   0x2   :  { %13 = vsyncpa [#allocation9], 0 }
   0x3   :  { %14 = vsyncpa [#allocation7], 0 }
   0x4   :  { %16 = vsyncpa [#allocation7 + $0x1], 0  ;;  %s1531_s18 = smov 0   ;;  %s1533_s19 = smov 0  }
   0x5   :  { %s1535_s20 = smov 0   ;;  %s1537_s21 = smov 0  }
   0x6   :  { %s1539_s22 = smov 0   ;;  %s1541_s23 = smov 0  }
   0x7 LB: > { %s1092_s24 = sadd.s32 4294967295, %s1491_s23   ;;  %p1094_p0 = scmp.ge.s32.totalorder %s1491_s23, 1  ;;  %s1491_s23 = sphi %s1541_s23, %s22_s23   ;;  %s1487_s22 = sphi %s1539_s22, %s1817_s22   ;;  %s1483_s21 = sphi %s1537_s21, %s1816_s21   ;;  %s1479_s20 = sphi %s1535_s20, %s1815_s20   ;;  %s1475_s19 = sphi %s1533_s19, %s1814_s19   ;;  %s1471_s18 = sphi %s1531_s18, %s1813_s18  }
   0x8   : > { %p1565_p1 = scmp.eq.s32.totalorder %s1092_s24, 0  ;;  %p179_p2 = scmp.lt.s32.totalorder %s1491_s23, 3 }
   0x9   : > { %s190_s28 = sshll.u32 %s1803_s1, 4  ;;  %s1493_s30 = smov [#allocation8]   ;;  %s191_s28 = int_to_ptr.hbm [resolvable:$true] %s190_s28 }
   0xa   : > { %p1573_p3 = pnand %p1094_p0, %p179_p2  ;;  %s192_s6 = sshll.u32 %s1493_s30, 4  ;;  %s193_s6 = int_to_ptr.vmem [resolvable:$true] %s192_s6 }
   0xb   : > { %p1097_p6 = scmp.ge.s32.totalorder %s1491_s23, 2  ;;  %s207_s9 = sshll.u32 %s1805_s3, 4  ;;  %s208_s9 = int_to_ptr.hbm [resolvable:$true] %s207_s9 }
   0xc   : > { %p1168_p4 = pneg %p1573_p3  ;;  %s1494_s10 = smov 64  }
   0xd   : > { %s1495_s11 = smov 4   ;;  %s1496_s12 = smov [#allocation10]  }
   0xe   : > { %p1169_p5 = pnand %p1168_p4, %p1565_p1  ;;  %s209_s13 = sshll.u32 %s1496_s12, 4  ;;  %s210_s13 = int_to_ptr.vmem [resolvable:$true] %s209_s13 }
   0xf   : > { %s34_s14 = sadd.s32 1, %s1487_s22  ;;  %s1093_s15 = sadd.s32 4294967294, %s1491_s23  }
  0x10   : > { %1171 = dma.hbm_to_vmem [thread:$0]  (!%p1169_p5), %s191_s28, 512, %s193_s6, [#allocation9], %s1494_s10, %s1494_s10, %s1495_s11  }
  0x11   : > { %1174 = dma.hbm_to_vmem [thread:$0]  (!%p1169_p5), %s208_s9, 256, %s210_s13, [#allocation9], %s1494_s10, %s1494_s10, %s1495_s11  }
  0x12   : > { %p36_p7 = scmp.ge.s32.totalorder %s34_s14, 2  ;;  %s43_s16 = sadd.s32 1, %s1479_s20 }
  0x13   : > { %p50_p8 = scmp.ne.s32.totalorder %s1479_s20, %s1475_s19  ;;  %p51_p9 = scmp.eq.s32.totalorder %s1491_s23, 0 }
  0x14   : > { %s1819_s14 = smov (%p36_p7, %s34_s14), 0  ;;  %p56_p10 = scmp.ne.s32.totalorder %s1475_s19, %s1471_s18 }
  0x15   : > { %s38_s17 = ssub.s32 %s1487_s22, %s1819_s14  ;;  %p166_p11 = scmp.eq.s32.totalorder %s1092_s24, 1 }
  0x16   : > { %p41_p12 = scmp.eq.s32.totalorder %s38_s17, 0  ;;  %p1601_p13 = por %p1565_p1, %p56_p10 }
  0x17   : > { %p1605_p0 = por %p166_p11, %p50_p8  ;;  %p172_p2 = scmp.eq.s32.totalorder %s1093_s15, 1 }
  0x18   : > { %s1610_s28 = scalar_select %p41_p12, %s1479_s20, %s43_s16  }
  0x19   : > { %p52_p4 = por %p51_p9, %p50_p8  ;;  %p1612_p5 = por %p172_p2, %p56_p10 }
  0x1a   : > { %s226_s6 = sand.u32 1, %s1479_s20   ;;  %s1099_s24 = sshll.u32 %s1487_s22, 2 }
  0x1b   : > { %p1185_p7 = scmp.lt.s32.totalorder %s1491_s23, 2  ;;  %s1098_s7 = sshll.u32 %s226_s6, 2 }
  0x1c   : > { %s235_s10 = scalar_lea.hbm %s1802_s0, %s1099_s24  ;;  %s230_s12 = scalar_lea.vmem [#allocation5], %s1098_s7 }
  0x1d   : > { %s237_s11 = sshll.u32 %s235_s10, 4  ;;  %s239_s13 = sshll.u32 %s230_s12, 4  ;;  %s238_s11 = int_to_ptr.hbm [resolvable:$true] %s237_s11  ;;  %s240_s13 = int_to_ptr.vmem [resolvable:$true] %s239_s13 }
  0x1e   : > { %p1176_p11 = pnand %p1185_p7, %p52_p4  ;;  %s227_s15 = scalar_lea.sflag [#allocation6], %s226_s6 }
  0x1f   : > { %248 = sbr.rel (%p1573_p3) target bundleno = 5278 (0x149e), region = 40  ;;  %s1625_s16 = sand.u32 (!%p1573_p3), 1, %s1475_s19  }
  0x20   : > { %1178 = dma.hbm_to_vmem [thread:$0]  (!%p1176_p11), %s238_s11, 64, %s240_s13, %s227_s15  }
  0x21   : > { %s1101_s17 = sshll.u32 (!%p1573_p3), %s1625_s16, 2  ;;  %s251_s8 = scalar_lea.sflag (!%p1573_p3), [#allocation6], %s1625_s16 }
  0x22   : > { %s1629_s24 = scalar_lea.vmem (!%p1573_p3), [#allocation5], %s1101_s17 }
  0x24   : > { %1458 = dma.done.wait (%p1601_p13), %s251_s8, 64  }
  0x25   : > { %1460 = vsyncadd (%p1601_p13), %s251_s8, 4294967232 }
  0x26   : > { %1462 = dma.done.wait (%p1565_p1), [#allocation9], 768  }
  0x27   : > { %1464 = vsyncadd (%p1565_p1), [#allocation9], 4294966528  ;;  %vm297_vm0 = vcmask 253952   ;;  %v1497_v0 = vmov 0.0   ;;  %v1153_v1 = vld [vmem:[#allocation8 + $0x18] sm:$0xff]  ;;  %v1152_v4 = vld [vmem:[#allocation8 + $0x10] sm:$0xff] }
  0x28   : > { %298 = vst.msk [vmem:[#allocation2] sm:$0x1] %vm297_vm0, %v1497_v0  ;;  %353 = vmatpush.bf16.msra.mxu0 %v1153_v1  ;;  %432 = vmatpush.bf16.msra.mxu1 %v1153_v1  ;;  %v1151_v7 = vld [vmem:[#allocation8 + $0x8] sm:$0xff]  ;;  %s1498_s25 = smov 32   ;;  %v1150_v8 = vld [vmem:[#allocation8] sm:$0xff]  ;;  %vm318_vm1 = vcmask 261120  }
  0x29   : > { %299 = vst.msk [vmem:[#allocation3] sm:$0x1] %vm297_vm0, %v1497_v0  ;;  %503 = vmatpush.bf16.msra.mxu2 %v1153_v1  ;;  %578 = vmatpush.bf16.msra.mxu3 %v1153_v1  ;;  %v311_v10 = vld [vmem:[%s1629_s24] sm:$0x1]  ;;  %vm346_vm2 = vcmask 523264   ;;  %s1499_s6 = smov 64  }
  0x2a   : > { %v1649_v13 = vld [vmem:[%s1804_s2] sm:$0x1]  ;;  %v410_v44 = vld [vmem:[%s1629_s24] sm:$0x1]  ;;  %s1500_s7 = smov 96   ;;  %s1104_s11 = sshll.u32 %s1625_s16, 3 }
  0x2b   : > { %s1147_s12 = sshll.u32 %s1483_s21, 3  ;;  %s291_s8 = scalar_lea.vmem [#allocation11], %s1104_s11 }
  0x2c   : > { %354 = vmatpush.bf16.msra.mxu0 %v1152_v4  ;;  %433 = vmatpush.bf16.msra.mxu1 %v1152_v4  ;;  %s988_s17 = scalar_lea.hbm %s1807_s5, %s1147_s12  ;;  %s977_s29 = scalar_lea.sflag [#allocation7], %s1625_s16 }
  0x2d   : > { %504 = vmatpush.bf16.msra.mxu2 %v1152_v4  ;;  %579 = vmatpush.bf16.msra.mxu3 %v1152_v4  ;;  %s1425_s9 = scalar_lea.hbm %s1807_s5, 16 }
  0x2f   : > { %v309_v2 = vld [vmem:[#allocation2] sm:$0x1] }
  0x30   : > { %v312_v3 = vpack.c.bf16 %v309_v2, %v309_v2  ;;  %355 = vmatpush.bf16.msra.mxu0 %v1151_v7  ;;  %434 = vmatpush.bf16.msra.mxu1 %v1151_v7  ;;  %v1245_v9 = vld [vmem:[#allocation3] ss:$0 sm:$0xff] }
  0x31   : > { %505 = vmatpush.bf16.msra.mxu2 %v1151_v7  ;;  %580 = vmatpush.bf16.msra.mxu3 %v1151_v7 }
  0x32   : > { %v314_v5 = vunpack.c.l.b16 %v312_v3  ;;  %384 = vrot.lane.b32.xlu1 %v1245_v9, %s1498_s25 }
  0x34   : > { %v315_v6 = vpack.c.b16 %v314_v5, %v314_v5  ;;  %356 = vmatpush.bf16.msra.mxu0 %v1150_v8  ;;  %435 = vmatpush.bf16.msra.mxu1 %v1150_v8 }
  0x35   : > { %506 = vmatpush.bf16.msra.mxu2 %v1150_v8  ;;  %581 = vmatpush.bf16.msra.mxu3 %v1150_v8 }
  0x36   : > { %316 = vrot.lane.b32.xlu0 %v315_v6, %s1498_s25 }
  0x38   : > { %649 = vmatpush.bf16.msrb.mxu0 %v1153_v1  ;;  %724 = vmatpush.bf16.msrb.mxu1 %v1153_v1 }
  0x39   : > { %795 = vmatpush.bf16.msrb.mxu2 %v1153_v1  ;;  %870 = vmatpush.bf16.msrb.mxu3 %v1153_v1 }
  0x3c   : > { %650 = vmatpush.bf16.msrb.mxu0 %v1152_v4  ;;  %725 = vmatpush.bf16.msrb.mxu1 %v1152_v4 }
  0x3d   : > { %796 = vmatpush.bf16.msrb.mxu2 %v1152_v4  ;;  %871 = vmatpush.bf16.msrb.mxu3 %v1152_v4 }
  0x40   : > { %651 = vmatpush.bf16.msrb.mxu0 %v1151_v7  ;;  %726 = vmatpush.bf16.msrb.mxu1 %v1151_v7 }
  0x41   : > { %797 = vmatpush.bf16.msrb.mxu2 %v1151_v7  ;;  %872 = vmatpush.bf16.msrb.mxu3 %v1151_v7 }
  0x44   : > { %652 = vmatpush.bf16.msrb.mxu0 %v1150_v8  ;;  %727 = vmatpush.bf16.msrb.mxu1 %v1150_v8 }
  0x45   : > { %798 = vmatpush.bf16.msrb.mxu2 %v1150_v8  ;;  %873 = vmatpush.bf16.msrb.mxu3 %v1150_v8 }
  0xa4   : > { %v385_v33 = vpop.permute.xlu1 %384 }
  0xa8   : > { %v317_v11 = vpop.permute.xlu0 %316 }
  0xa9   : > { %v321_v12 = vsel %vm318_vm1, %v311_v10, %v317_v11 }
  0xaa   : > { %1121 = vmatmul.msk.bf16.vlgmr.msra.gmra.mxu0 %vm346_vm2, %v321_v12 }
 0x127   : > { %v358_v14 = vpop.f32.mrf.mxu0 }
 0x128   : > { %v359_v15 = vadd.f32 %v358_v14, %v1649_v13  ;;  %v483_v14 = vld [vmem:[%s1629_s24] sm:$0x2] }
 0x12a   : > { %1247 = vtanh.f32 %v359_v15  ;;  %v1122_v18 = vmul.f32 -1.442695, %v359_v15 }
 0x12c   : > { %1249 = vpow2.f32 %v1122_v18 }
 0x12f   : > { %v360_v16 = vpop.f32.mrf.mxu0 }
 0x130   : > { %v1248_v17 = vpop.eup %1247 }
 0x131   : > { %389 = vrot.lane.b32.xlu0 %v1248_v17, %s1499_s6 }
 0x132   : > { %v1250_v19 = vpop.eup %1249 }
 0x133   : > { %v365_v20 = vadd.f32 1.0, %v1250_v19 }
 0x135   : > { %1251 = vrcp.f32 %v365_v20  ;;  %v377_v26 = vand.u32 2147483648, %v365_v20  ;;  %vm371_vm4 = vweird.f32 %v365_v20  ;;  %v375_v27 = vand.u32 2147483647, %v365_v20 }
 0x137   : > { %v378_v29 = vor.u32 1.1754944e-38, %v377_v26  ;;  %vm376_vm6 = vcmp.eq.f32.partialorder %v375_v27, 8.507059e+37 }
 0x13b   : > { %v1252_v21 = vpop.eup %1251 }
 0x13c   : > { %v367_v22 = vmul.f32 %v1252_v21, %v365_v20  ;;  %vm372_vm3 = vweird.f32 %v1252_v21 }
 0x13d   : > { %vm373_vm5 = vmor %vm371_vm4, %vm372_vm3 }
 0x13e   : > { %v368_v23 = vsub.f32 1.0, %v367_v22 }
 0x140   : > { %v369_v24 = vmul.f32 %v1252_v21, %v368_v23 }
 0x142   : > { %v370_v25 = vadd.f32 %v1252_v21, %v369_v24 }
 0x144   : > { %v374_v28 = vsel %vm373_vm5, %v1252_v21, %v370_v25 }
 0x145   : > { %v379_v30 = vsel %vm376_vm6, %v378_v29, %v374_v28 }
 0x146   : > { %v387_v34 = vmul.f32 %v385_v33, %v379_v30 }
 0x1a3   : > { %v390_v31 = vpop.permute.xlu0 %389 }
 0x1a4   : > { %v392_v32 = vmul.f32 %v390_v31, %v379_v30 }
 0x1a6   : > { %394 = vrot.lane.b32.xlu1 %v392_v32, %s1498_s25 }
 0x218   : > { %v395_v35 = vpop.permute.xlu1 %394 }
 0x219   : > { %v397_v36 = vadd.f32 %v395_v35, %v387_v34 }
 0x21b   : > { %1253 = vtanh.f32 %v397_v36 }
 0x221   : > { %v1254_v37 = vpop.eup %1253 }
 0x222   : > { %400 = vrot.lane.b32.xlu2 %v1254_v37, %s1499_s6 }
 0x27c   : > { %v401_v38 = vpop.permute.xlu2 %400 }
 0x27d   : > { %v1655_v39 = vmul.f32 %v401_v38, %v379_v30 }
 0x27f   : > { %v411_v40 = vpack.c.bf16 %v1655_v39, %v1655_v39 }
 0x281   : > { %v413_v41 = vunpack.c.l.b16 %v411_v40 }
 0x283   : > { %v414_v42 = vpack.c.b16 %v413_v41, %v413_v41 }
 0x285   : > { %v416_v43 = vshll.u32 %v414_v42, 16 }
 0x287   : > { %418 = vrot.lane.b32.xlu2 %v416_v43, %s1499_s6 }
 0x2e1   : > { %v419_v45 = vpop.permute.xlu2 %418 }
 0x2e2   : > { %v422_v46 = vsel %vm318_vm1, %v410_v44, %v419_v45 }
 0x2e3   : > { %v423_v47 = vshrl.u32 %v422_v46, 16 }
 0x2e5   : > { %1123 = vmatmul.msk.bf16.vlgmr.msra.gmra.mxu1 %vm346_vm2, %v423_v47 }
 0x362   : > { %v437_v48 = vpop.f32.mrf.mxu1 }
 0x363   : > { %v438_v49 = vadd.f32 %v437_v48, %v1649_v13 }
 0x365   : > { %1255 = vtanh.f32 %v438_v49  ;;  %v1124_v52 = vmul.f32 -1.442695, %v438_v49  ;;  %v554_v49 = vld [vmem:[%s1629_s24] sm:$0x2] }
 0x367   : > { %1257 = vpow2.f32 %v1124_v52 }
 0x36a   : > { %v439_v50 = vpop.f32.mrf.mxu1 }
 0x36b   : > { %v1256_v51 = vpop.eup %1255 }
 0x36c   : > { %463 = vrot.lane.b32.xlu0 %v1256_v51, %s1499_s6 }
 0x36d   : > { %v1258_v53 = vpop.eup %1257 }
 0x36e   : > { %v444_v54 = vadd.f32 1.0, %v1258_v53 }
 0x370   : > { %1259 = vrcp.f32 %v444_v54  ;;  %v456_v60 = vand.u32 2147483648, %v444_v54  ;;  %vm450_vm8 = vweird.f32 %v444_v54  ;;  %v454_v61 = vand.u32 2147483647, %v444_v54 }
 0x372   : > { %v457_v63 = vor.u32 1.1754944e-38, %v456_v60  ;;  %vm455_vm10 = vcmp.eq.f32.partialorder %v454_v61, 8.507059e+37 }
 0x376   : > { %v1260_v55 = vpop.eup %1259 }
 0x377   : > { %v446_v56 = vmul.f32 %v1260_v55, %v444_v54  ;;  %vm451_vm7 = vweird.f32 %v1260_v55 }
 0x378   : > { %vm452_vm9 = vmor %vm450_vm8, %vm451_vm7 }
 0x379   : > { %v447_v57 = vsub.f32 1.0, %v446_v56 }
 0x37b   : > { %v448_v58 = vmul.f32 %v1260_v55, %v447_v57 }
 0x37d   : > { %v449_v59 = vadd.f32 %v1260_v55, %v448_v58 }
 0x37f   : > { %v453_v62 = vsel %vm452_vm9, %v1260_v55, %v449_v59 }
 0x380   : > { %v458_v1 = vsel %vm455_vm10, %v457_v63, %v453_v62 }
 0x381   : > { %v461_v3 = vmul.f32 %v458_v1, %v397_v36 }
 0x3de   : > { %v464_v0 = vpop.permute.xlu0 %463 }
 0x3df   : > { %v466_v2 = vmul.f32 %v464_v0, %v458_v1 }
 0x3e1   : > { %468 = vrot.lane.b32.xlu1 %v466_v2, %s1498_s25 }
 0x453   : > { %v469_v4 = vpop.permute.xlu1 %468 }
 0x454   : > { %v471_v5 = vadd.f32 %v469_v4, %v461_v3 }
 0x456   : > { %1261 = vtanh.f32 %v471_v5 }
 0x45c   : > { %v1262_v6 = vpop.eup %1261 }
 0x45d   : > { %474 = vrot.lane.b32.xlu2 %v1262_v6, %s1499_s6 }
 0x4b7   : > { %v475_v7 = vpop.permute.xlu2 %474 }
 0x4b8   : > { %v1667_v8 = vmul.f32 %v475_v7, %v458_v1 }
 0x4ba   : > { %v484_v9 = vpack.c.bf16 %v1667_v8, %v1667_v8 }
 0x4bc   : > { %v486_v10 = vunpack.c.l.b16 %v484_v9 }
 0x4be   : > { %v487_v11 = vpack.c.b16 %v486_v10, %v486_v10 }
 0x4c0   : > { %v488_v12 = vrot.slane %v487_v11, 7 }
 0x4c2   : > { %489 = vrot.lane.b32.xlu0 %v488_v12, %s1499_s6 }
 0x534   : > { %v490_v15 = vpop.permute.xlu0 %489 }
 0x535   : > { %v493_v16 = vsel %vm318_vm1, %v483_v14, %v490_v15 }
 0x536   : > { %v495_v17 = vrot.slane %v493_v16, 1 }
 0x538   : > { %1125 = vmatmul.msk.bf16.vlgmr.msra.gmra.mxu2 %vm346_vm2, %v495_v17 }
 0x5bb   : > { %v508_v18 = vpop.f32.mrf.mxu2 }
 0x5bc   : > { %v509_v19 = vadd.f32 %v508_v18, %v1649_v13 }
 0x5be   : > { %1263 = vtanh.f32 %v509_v19  ;;  %v1126_v22 = vmul.f32 -1.442695, %v509_v19 }
 0x5c0   : > { %1265 = vpow2.f32 %v1126_v22 }
 0x5c3   : > { %v510_v20 = vpop.f32.mrf.mxu2 }
 0x5c4   : > { %v1264_v21 = vpop.eup %1263 }
 0x5c5   : > { %534 = vrot.lane.b32.xlu1 %v1264_v21, %s1499_s6  ;;  %v629_v21 = vld [vmem:[%s1629_s24] sm:$0x4] }
 0x5c6   : > { %v1266_v23 = vpop.eup %1265 }
 0x5c7   : > { %v515_v24 = vadd.f32 1.0, %v1266_v23 }
 0x5c9   : > { %1267 = vrcp.f32 %v515_v24  ;;  %v527_v30 = vand.u32 2147483648, %v515_v24  ;;  %vm521_vm12 = vweird.f32 %v515_v24  ;;  %v525_v31 = vand.u32 2147483647, %v515_v24 }
 0x5cb   : > { %v528_v33 = vor.u32 1.1754944e-38, %v527_v30  ;;  %vm526_vm14 = vcmp.eq.f32.partialorder %v525_v31, 8.507059e+37 }
 0x5cf   : > { %v1268_v25 = vpop.eup %1267 }
 0x5d0   : > { %v517_v26 = vmul.f32 %v1268_v25, %v515_v24  ;;  %vm522_vm11 = vweird.f32 %v1268_v25 }
 0x5d1   : > { %vm523_vm13 = vmor %vm521_vm12, %vm522_vm11 }
 0x5d2   : > { %v518_v27 = vsub.f32 1.0, %v517_v26 }
 0x5d4   : > { %v519_v28 = vmul.f32 %v1268_v25, %v518_v27 }
 0x5d6   : > { %v520_v29 = vadd.f32 %v1268_v25, %v519_v28 }
 0x5d8   : > { %v524_v32 = vsel %vm523_vm13, %v1268_v25, %v520_v29 }
 0x5d9   : > { %v529_v35 = vsel %vm526_vm14, %v528_v33, %v524_v32 }
 0x5da   : > { %v532_v37 = vmul.f32 %v529_v35, %v471_v5 }
 0x637   : > { %v535_v34 = vpop.permute.xlu1 %534 }
 0x638   : > { %v537_v36 = vmul.f32 %v535_v34, %v529_v35 }
 0x63a   : > { %539 = vrot.lane.b32.xlu2 %v537_v36, %s1498_s25 }
 0x694   : > { %v540_v38 = vpop.permute.xlu2 %539 }
 0x695   : > { %v542_v40 = vadd.f32 %v540_v38, %v532_v37 }
 0x697   : > { %1269 = vtanh.f32 %v542_v40 }
 0x69d   : > { %v1270_v41 = vpop.eup %1269 }
 0x69e   : > { %545 = vrot.lane.b32.xlu0 %v1270_v41, %s1499_s6 }
 0x710   : > { %v546_v42 = vpop.permute.xlu0 %545 }
 0x711   : > { %v1679_v43 = vmul.f32 %v546_v42, %v529_v35 }
 0x713   : > { %v555_v44 = vpack.c.bf16 %v1679_v43, %v1679_v43 }
 0x715   : > { %v557_v45 = vunpack.c.l.b16 %v555_v44 }
 0x717   : > { %v558_v46 = vpack.c.b16 %v557_v45, %v557_v45 }
 0x719   : > { %v560_v47 = vshll.u32 %v558_v46, 16 }
 0x71b   : > { %v562_v48 = vrot.slane %v560_v47, 7 }
 0x71d   : > { %563 = vrot.lane.b32.xlu1 %v562_v48, %s1499_s6 }
 0x78f   : > { %v564_v50 = vpop.permute.xlu1 %563 }
 0x790   : > { %v567_v51 = vsel %vm318_vm1, %v554_v49, %v564_v50 }
 0x791   : > { %v568_v52 = vshrl.u32 %v567_v51, 16 }
 0x793   : > { %v570_v53 = vrot.slane %v568_v52, 1 }
 0x795   : > { %1127 = vmatmul.msk.bf16.vlgmr.msra.gmra.mxu3 %vm346_vm2, %v570_v53 }
 0x818   : > { %v583_v54 = vpop.f32.mrf.mxu3 }
 0x819   : > { %v584_v55 = vadd.f32 %v583_v54, %v1649_v13 }
 0x81b   : > { %1271 = vtanh.f32 %v584_v55  ;;  %v1128_v58 = vmul.f32 -1.442695, %v584_v55 }
 0x81d   : > { %1273 = vpow2.f32 %v1128_v58 }
 0x820   : > { %v585_v56 = vpop.f32.mrf.mxu3 }
 0x821   : > { %v1272_v57 = vpop.eup %1271 }
 0x822   : > { %609 = vrot.lane.b32.xlu2 %v1272_v57, %s1499_s6  ;;  %v700_v57 = vld [vmem:[%s1629_s24] sm:$0x4] }
 0x823   : > { %v1274_v59 = vpop.eup %1273 }
 0x824   : > { %v590_v60 = vadd.f32 1.0, %v1274_v59 }
 0x826   : > { %1275 = vrcp.f32 %v590_v60  ;;  %v602_v2 = vand.u32 2147483648, %v590_v60  ;;  %vm596_vm3 = vweird.f32 %v590_v60  ;;  %v600_v3 = vand.u32 2147483647, %v590_v60 }
 0x828   : > { %v603_v5 = vor.u32 1.1754944e-38, %v602_v2  ;;  %vm601_vm5 = vcmp.eq.f32.partialorder %v600_v3, 8.507059e+37 }
 0x82c   : > { %v1276_v61 = vpop.eup %1275 }
 0x82d   : > { %v592_v62 = vmul.f32 %v1276_v61, %v590_v60  ;;  %vm597_vm15 = vweird.f32 %v1276_v61 }
 0x82e   : > { %vm598_vm4 = vmor %vm596_vm3, %vm597_vm15 }
 0x82f   : > { %v593_v63 = vsub.f32 1.0, %v592_v62 }
 0x831   : > { %v594_v0 = vmul.f32 %v1276_v61, %v593_v63 }
 0x833   : > { %v595_v1 = vadd.f32 %v1276_v61, %v594_v0 }
 0x835   : > { %v599_v4 = vsel %vm598_vm4, %v1276_v61, %v595_v1 }
 0x836   : > { %v604_v7 = vsel %vm601_vm5, %v603_v5, %v599_v4 }
 0x837   : > { %v607_v10 = vmul.f32 %v604_v7, %v542_v40 }
 0x87c   : > { %v610_v6 = vpop.permute.xlu2 %609 }
 0x87d   : > { %v612_v9 = vmul.f32 %v610_v6, %v604_v7 }
 0x87f   : > { %614 = vrot.lane.b32.xlu0 %v612_v9, %s1498_s25 }
 0x8f1   : > { %v615_v11 = vpop.permute.xlu0 %614 }
 0x8f2   : > { %v617_v12 = vadd.f32 %v615_v11, %v607_v10 }
 0x8f4   : > { %1277 = vtanh.f32 %v617_v12 }
 0x8fa   : > { %v1278_v14 = vpop.eup %1277 }
 0x8fb   : > { %620 = vrot.lane.b32.xlu1 %v1278_v14, %s1499_s6 }
 0x96d   : > { %v621_v15 = vpop.permute.xlu1 %620 }
 0x96e   : > { %v1691_v16 = vmul.f32 %v621_v15, %v604_v7 }
 0x970   : > { %v630_v17 = vpack.c.bf16 %v1691_v16, %v1691_v16 }
 0x972   : > { %v632_v18 = vunpack.c.l.b16 %v630_v17 }
 0x974   : > { %v633_v19 = vpack.c.b16 %v632_v18, %v632_v18 }
 0x976   : > { %v634_v20 = vrot.slane %v633_v19, 6 }
 0x978   : > { %635 = vrot.lane.b32.xlu2 %v634_v20, %s1499_s6 }
 0x9d2   : > { %v636_v22 = vpop.permute.xlu2 %635 }
 0x9d3   : > { %v639_v23 = vsel %vm318_vm1, %v629_v21, %v636_v22 }
 0x9d4   : > { %v641_v24 = vrot.slane %v639_v23, 2 }
 0x9d6   : > { %1129 = vmatmul.msk.bf16.vlgmr.msrb.gmra.mxu0 %vm346_vm2, %v641_v24 }
 0xa53   : > { %v654_v25 = vpop.f32.mrf.mxu0 }
 0xa54   : > { %v655_v26 = vadd.f32 %v654_v25, %v1649_v13 }
 0xa56   : > { %1279 = vtanh.f32 %v655_v26  ;;  %v1130_v29 = vmul.f32 -1.442695, %v655_v26 }
 0xa58   : > { %1281 = vpow2.f32 %v1130_v29 }
 0xa5b   : > { %v656_v27 = vpop.f32.mrf.mxu0 }
 0xa5c   : > { %v1280_v28 = vpop.eup %1279 }
 0xa5d   : > { %680 = vrot.lane.b32.xlu0 %v1280_v28, %s1499_s6 }
 0xa5e   : > { %v1282_v30 = vpop.eup %1281 }
 0xa5f   : > { %v661_v31 = vadd.f32 1.0, %v1282_v30  ;;  %v775_v30 = vld [vmem:[%s1629_s24] sm:$0x8] }
 0xa61   : > { %1283 = vrcp.f32 %v661_v31  ;;  %v673_v37 = vand.u32 2147483648, %v661_v31  ;;  %vm667_vm7 = vweird.f32 %v661_v31  ;;  %v671_v38 = vand.u32 2147483647, %v661_v31 }
 0xa63   : > { %v674_v41 = vor.u32 1.1754944e-38, %v673_v37  ;;  %vm672_vm9 = vcmp.eq.f32.partialorder %v671_v38, 8.507059e+37 }
 0xa67   : > { %v1284_v32 = vpop.eup %1283 }
 0xa68   : > { %v663_v33 = vmul.f32 %v1284_v32, %v661_v31  ;;  %vm668_vm6 = vweird.f32 %v1284_v32 }
 0xa69   : > { %vm669_vm8 = vmor %vm667_vm7, %vm668_vm6 }
 0xa6a   : > { %v664_v34 = vsub.f32 1.0, %v663_v33 }
 0xa6c   : > { %v665_v35 = vmul.f32 %v1284_v32, %v664_v34 }
 0xa6e   : > { %v666_v36 = vadd.f32 %v1284_v32, %v665_v35 }
 0xa70   : > { %v670_v40 = vsel %vm669_vm8, %v1284_v32, %v666_v36 }
 0xa71   : > { %v675_v44 = vsel %vm672_vm9, %v674_v41, %v670_v40 }
 0xa72   : > { %v678_v46 = vmul.f32 %v675_v44, %v617_v12 }
 0xacf   : > { %v681_v42 = vpop.permute.xlu0 %680 }
 0xad0   : > { %v683_v45 = vmul.f32 %v681_v42, %v675_v44 }
 0xad2   : > { %685 = vrot.lane.b32.xlu1 %v683_v45, %s1498_s25 }
 0xb44   : > { %v686_v47 = vpop.permute.xlu1 %685 }
 0xb45   : > { %v688_v48 = vadd.f32 %v686_v47, %v678_v46 }
 0xb47   : > { %1285 = vtanh.f32 %v688_v48 }
 0xb4d   : > { %v1286_v49 = vpop.eup %1285 }
 0xb4e   : > { %691 = vrot.lane.b32.xlu2 %v1286_v49, %s1499_s6 }
 0xba8   : > { %v692_v50 = vpop.permute.xlu2 %691 }
 0xba9   : > { %v1703_v51 = vmul.f32 %v692_v50, %v675_v44 }
 0xbab   : > { %v701_v52 = vpack.c.bf16 %v1703_v51, %v1703_v51 }
 0xbad   : > { %v703_v53 = vunpack.c.l.b16 %v701_v52 }
 0xbaf   : > { %v704_v54 = vpack.c.b16 %v703_v53, %v703_v53 }
 0xbb1   : > { %v706_v55 = vshll.u32 %v704_v54, 16 }
 0xbb3   : > { %v708_v56 = vrot.slane %v706_v55, 6 }
 0xbb5   : > { %709 = vrot.lane.b32.xlu0 %v708_v56, %s1499_s6 }
 0xc27   : > { %v710_v58 = vpop.permute.xlu0 %709 }
 0xc28   : > { %v713_v59 = vsel %vm318_vm1, %v700_v57, %v710_v58 }
 0xc29   : > { %v714_v60 = vshrl.u32 %v713_v59, 16 }
 0xc2b   : > { %v716_v61 = vrot.slane %v714_v60, 2 }
 0xc2d   : > { %1131 = vmatmul.msk.bf16.vlgmr.msrb.gmra.mxu1 %vm346_vm2, %v716_v61 }
 0xcaa   : > { %v729_v62 = vpop.f32.mrf.mxu1 }
 0xcab   : > { %v730_v63 = vadd.f32 %v729_v62, %v1649_v13 }
 0xcad   : > { %1287 = vtanh.f32 %v730_v63  ;;  %v1132_v2 = vmul.f32 -1.442695, %v730_v63 }
 0xcaf   : > { %1289 = vpow2.f32 %v1132_v2 }
 0xcb2   : > { %v731_v0 = vpop.f32.mrf.mxu1 }
 0xcb3   : > { %v1288_v1 = vpop.eup %1287 }
 0xcb4   : > { %755 = vrot.lane.b32.xlu1 %v1288_v1, %s1499_s6 }
 0xcb5   : > { %v1290_v3 = vpop.eup %1289 }
 0xcb6   : > { %v736_v4 = vadd.f32 1.0, %v1290_v3  ;;  %v846_v3 = vld [vmem:[%s1629_s24] sm:$0x8]  ;;  %s990_s24 = sshll.u32 %s291_s8, 4  ;;  %s991_s24 = int_to_ptr.vmem [resolvable:$true] %s990_s24 }
 0xcb8   : > { %1291 = vrcp.f32 %v736_v4  ;;  %v748_v11 = vand.u32 2147483648, %v736_v4  ;;  %vm742_vm11 = vweird.f32 %v736_v4  ;;  %v746_v12 = vand.u32 2147483647, %v736_v4 }
 0xcba   : > { %v749_v15 = vor.u32 1.1754944e-38, %v748_v11  ;;  %vm747_vm13 = vcmp.eq.f32.partialorder %v746_v12, 8.507059e+37 }
 0xcbe   : > { %v1292_v5 = vpop.eup %1291 }
 0xcbf   : > { %v738_v6 = vmul.f32 %v1292_v5, %v736_v4  ;;  %vm743_vm10 = vweird.f32 %v1292_v5 }
 0xcc0   : > { %vm744_vm12 = vmor %vm742_vm11, %vm743_vm10 }
 0xcc1   : > { %v739_v7 = vsub.f32 1.0, %v738_v6 }
 0xcc3   : > { %v740_v9 = vmul.f32 %v1292_v5, %v739_v7 }
 0xcc5   : > { %v741_v10 = vadd.f32 %v1292_v5, %v740_v9 }
 0xcc7   : > { %v745_v14 = vsel %vm744_vm12, %v1292_v5, %v741_v10 }
 0xcc8   : > { %v750_v18 = vsel %vm747_vm13, %v749_v15, %v745_v14 }
 0xcc9   : > { %v753_v20 = vmul.f32 %v750_v18, %v688_v48 }
 0xd26   : > { %v756_v17 = vpop.permute.xlu1 %755 }
 0xd27   : > { %v758_v19 = vmul.f32 %v756_v17, %v750_v18 }
 0xd29   : > { %760 = vrot.lane.b32.xlu2 %v758_v19, %s1498_s25 }
 0xd83   : > { %v761_v21 = vpop.permute.xlu2 %760 }
 0xd84   : > { %v763_v22 = vadd.f32 %v761_v21, %v753_v20 }
 0xd86   : > { %1293 = vtanh.f32 %v763_v22 }
 0xd8c   : > { %v1294_v23 = vpop.eup %1293 }
 0xd8d   : > { %766 = vrot.lane.b32.xlu0 %v1294_v23, %s1499_s6 }
 0xdff   : > { %v767_v24 = vpop.permute.xlu0 %766 }
 0xe00   : > { %v1715_v25 = vmul.f32 %v767_v24, %v750_v18 }
 0xe02   : > { %v776_v26 = vpack.c.bf16 %v1715_v25, %v1715_v25 }
 0xe04   : > { %v778_v27 = vunpack.c.l.b16 %v776_v26 }
 0xe06   : > { %v779_v28 = vpack.c.b16 %v778_v27, %v778_v27 }
 0xe08   : > { %v780_v29 = vrot.slane %v779_v28, 5 }
 0xe0a   : > { %781 = vrot.lane.b32.xlu1 %v780_v29, %s1499_s6 }
 0xe7c   : > { %v782_v31 = vpop.permute.xlu1 %781 }
 0xe7d   : > { %v785_v32 = vsel %vm318_vm1, %v775_v30, %v782_v31 }
 0xe7e   : > { %v787_v33 = vrot.slane %v785_v32, 3 }
 0xe80   : > { %1133 = vmatmul.msk.bf16.vlgmr.msrb.gmra.mxu2 %vm346_vm2, %v787_v33 }
 0xf03   : > { %v800_v34 = vpop.f32.mrf.mxu2 }
 0xf04   : > { %v801_v35 = vadd.f32 %v800_v34, %v1649_v13 }
 0xf06   : > { %1295 = vtanh.f32 %v801_v35  ;;  %v1134_v38 = vmul.f32 -1.442695, %v801_v35 }
 0xf08   : > { %1297 = vpow2.f32 %v1134_v38 }
 0xf0b   : > { %v802_v36 = vpop.f32.mrf.mxu2 }
 0xf0c   : > { %v1296_v37 = vpop.eup %1295 }
 0xf0d   : > { %826 = vrot.lane.b32.xlu2 %v1296_v37, %s1499_s6 }
 0xf0e   : > { %v1298_v40 = vpop.eup %1297 }
 0xf0f   : > { %v807_v41 = vadd.f32 1.0, %v1298_v40 }
 0xf11   : > { %1299 = vrcp.f32 %v807_v41  ;;  %v819_v48 = vand.u32 2147483648, %v807_v41  ;;  %vm813_vm15 = vweird.f32 %v807_v41  ;;  %v817_v49 = vand.u32 2147483647, %v807_v41 }
 0xf13   : > { %v820_v52 = vor.u32 1.1754944e-38, %v819_v48  ;;  %vm818_vm4 = vcmp.eq.f32.partialorder %v817_v49, 8.507059e+37 }
 0xf17   : > { %v1300_v42 = vpop.eup %1299 }
 0xf18   : > { %v809_v44 = vmul.f32 %v1300_v42, %v807_v41  ;;  %vm814_vm14 = vweird.f32 %v1300_v42  ;;  %v1154_v41 = vld [vmem:[#allocation10] sm:$0xff] }
 0xf19   : > { %vm815_vm3 = vmor %vm813_vm15, %vm814_vm14 }
 0xf1a   : > { %v810_v45 = vsub.f32 1.0, %v809_v44 }
 0xf1c   : > { %v811_v46 = vmul.f32 %v1300_v42, %v810_v45  ;;  %v1246_v45 = vld [vmem:[%s1806_s4] ss:$0 sm:$0xff] }
 0xf1e   : > { %v812_v47 = vadd.f32 %v1300_v42, %v811_v46 }
 0xf20   : > { %v816_v50 = vsel %vm815_vm3, %v1300_v42, %v812_v47 }
 0xf21   : > { %v821_v54 = vsel %vm818_vm4, %v820_v52, %v816_v50 }
 0xf22   : > { %v824_v56 = vmul.f32 %v821_v54, %v763_v22 }
 0xf67   : > { %v827_v53 = vpop.permute.xlu2 %826 }
 0xf68   : > { %v829_v55 = vmul.f32 %v827_v53, %v821_v54 }
 0xf6a   : > { %831 = vrot.lane.b32.xlu0 %v829_v55, %s1498_s25 }
 0xfdc   : > { %v832_v57 = vpop.permute.xlu0 %831 }
 0xfdd   : > { %v834_v58 = vadd.f32 %v832_v57, %v824_v56 }
 0xfdf   : > { %1301 = vtanh.f32 %v834_v58 }
 0xfe5   : > { %v1302_v59 = vpop.eup %1301 }
 0xfe6   : > { %837 = vrot.lane.b32.xlu1 %v1302_v59, %s1499_s6 }
0x1058   : > { %v838_v60 = vpop.permute.xlu1 %837 }
0x1059   : > { %v840_v61 = vmul.f32 %v838_v60, %v821_v54 }
0x105b   : > { %v847_v62 = vpack.c.bf16 %v840_v61, %v840_v61 }
0x105d   : > { %v849_v63 = vunpack.c.l.b16 %v847_v62 }
0x105f   : > { %v850_v0 = vpack.c.b16 %v849_v63, %v849_v63 }
0x1061   : > { %v852_v1 = vshll.u32 %v850_v0, 16 }
0x1063   : > { %v854_v2 = vrot.slane %v852_v1, 5 }
0x1065   : > { %855 = vrot.lane.b32.xlu2 %v854_v2, %s1499_s6 }
0x10bf   : > { %v856_v4 = vpop.permute.xlu2 %855 }
0x10c0   : > { %v859_v5 = vsel %vm318_vm1, %v846_v3, %v856_v4 }
0x10c1   : > { %v860_v6 = vshrl.u32 %v859_v5, 16 }
0x10c3   : > { %v862_v7 = vrot.slane %v860_v6, 3 }
0x10c5   : > { %1135 = vmatmul.msk.bf16.vlgmr.msrb.gmra.mxu3 %vm346_vm2, %v862_v7 }
0x1148   : > { %v875_v9 = vpop.f32.mrf.mxu3 }
0x1149   : > { %v876_v10 = vadd.f32 %v875_v9, %v1649_v13 }
0x114b   : > { %1303 = vtanh.f32 %v876_v10  ;;  %v1136_v14 = vmul.f32 -1.442695, %v876_v10 }
0x114d   : > { %1305 = vpow2.f32 %v1136_v14 }
0x1150   : > { %v877_v11 = vpop.f32.mrf.mxu3 }
0x1151   : > { %v1304_v12 = vpop.eup %1303 }
0x1152   : > { %901 = vrot.lane.b32.xlu0 %v1304_v12, %s1499_s6 }
0x1153   : > { %v1306_v15 = vpop.eup %1305 }
0x1154   : > { %v882_v17 = vadd.f32 1.0, %v1306_v15 }
0x1156   : > { %1307 = vrcp.f32 %v882_v17  ;;  %v894_v22 = vand.u32 2147483648, %v882_v17  ;;  %vm888_vm5 = vweird.f32 %v882_v17  ;;  %v892_v23 = vand.u32 2147483647, %v882_v17 }
0x1158   : > { %v895_v24 = vor.u32 1.1754944e-38, %v894_v22  ;;  %vm893_vm7 = vcmp.eq.f32.partialorder %v892_v23, 8.507059e+37 }
0x115a   : > { %405 = vrot.lane.b32.xlu0 %v1655_v39, %s1498_s25 }
0x115c   : > { %v1308_v18 = vpop.eup %1307 }
0x115d   : > { %v884_v13 = vmul.f32 %v1308_v18, %v882_v17  ;;  %vm889_vm2 = vweird.f32 %v1308_v18 }
0x115e   : > { %vm890_vm6 = vmor %vm888_vm5, %vm889_vm2 }
0x115f   : > { %v885_v19 = vsub.f32 1.0, %v884_v13 }
0x1161   : > { %v886_v20 = vmul.f32 %v1308_v18, %v885_v19 }
0x1162   : > { %625 = vrot.lane.b32.xlu0 %v1691_v16, %s1498_s25 }
0x1163   : > { %v887_v21 = vadd.f32 %v1308_v18, %v886_v20 }
0x1165   : > { %v891_v39 = vsel %vm890_vm6, %v1308_v18, %v887_v21 }
0x1166   : > { %v896_v26 = vsel %vm893_vm7, %v895_v24, %v891_v39 }
0x1167   : > { %v899_v31 = vmul.f32 %v896_v26, %v834_v58 }
0x116a   : > { %842 = vrot.lane.b32.xlu0 %v840_v61, %s1498_s25 }
0x11c4   : > { %v902_v16 = vpop.permute.xlu0 %901 }
0x11c5   : > { %v904_v27 = vmul.f32 %v902_v16, %v896_v26 }
0x11c7   : > { %906 = vrot.lane.b32.xlu1 %v904_v27, %s1498_s25 }
0x11cc   : > { %v406_v28 = vpop.permute.xlu0 %405 }
0x11cd   : > { %409 = vst.msk [vmem:[#allocation4] sm:$0x1] %vm297_vm0, %v406_v28 }
0x11cf   : > { %479 = vrot.lane.b32.xlu1 %v1667_v8, %s1498_s25 }
0x11d4   : > { %v626_v29 = vpop.permute.xlu0 %625 }
0x11d5   : > { %628 = vst.msk [vmem:[#allocation4 + $0x3] sm:$0x1] %vm297_vm0, %v626_v29 }
0x11d7   : > { %696 = vrot.lane.b32.xlu1 %v1703_v51, %s1498_s25  ;;  %v1155_v51 = vld [vmem:[#allocation10 + $0x8] sm:$0xff] }
0x11d8   : > { %958 = vmatpush.bf16.msra.mxu0 %v1155_v51 }
0x11dc   : > { %v843_v30 = vpop.permute.xlu0 %842  ;;  %959 = vmatpush.bf16.msra.mxu0 %v1154_v41 }
0x11dd   : > { %845 = vst.msk [vmem:[#allocation4 + $0x6] sm:$0x1] %vm297_vm0, %v843_v30 }
0x1239   : > { %v907_v32 = vpop.permute.xlu1 %906 }
0x123a   : > { %v909_v33 = vadd.f32 %v907_v32, %v899_v31 }
0x123c   : > { %1309 = vtanh.f32 %v909_v33 }
0x1241   : > { %v480_v34 = vpop.permute.xlu1 %479 }
0x1242   : > { %v1310_v35 = vpop.eup %1309  ;;  %482 = vst.msk [vmem:[#allocation4 + $0x1] sm:$0x1] %vm297_vm0, %v480_v34 }
0x1243   : > { %912 = vrot.lane.b32.xlu2 %v1310_v35, %s1499_s6 }
0x1249   : > { %v697_v8 = vpop.permute.xlu1 %696 }
0x124a   : > { %699 = vst.msk [vmem:[#allocation4 + $0x4] sm:$0x1] %vm297_vm0, %v697_v8 }
0x124b   : > { %550 = vrot.lane.b32.xlu2 %v1679_v43, %s1498_s25 }
0x1253   : > { %771 = vrot.lane.b32.xlu2 %v1715_v25, %s1498_s25 }
0x129d   : > { %v913_v36 = vpop.permute.xlu2 %912 }
0x129e   : > { %v915_v37 = vmul.f32 %v913_v36, %v896_v26 }
0x12a0   : > { %917 = vrot.lane.b32.xlu1 %v915_v37, %s1498_s25  ;;  %s992_s25 = sshll.u32 %s988_s17, 4  ;;  %s993_s25 = int_to_ptr.hbm [resolvable:$true] %s992_s25 }
0x12a1   : > { %s1419_s26 = sshra.s32 %s993_s25, 4  ;;  %s1420_s26 = int_to_ptr.hbm [resolvable:$true] %s1419_s26 }
0x12a2   : > { %s1421_s6 = scalar_lea.hbm %s1420_s26, 8  ;;  %p1426_p9 = scmp.lt.s32.totalorder %s1420_s26, %s1807_s5 }
0x12a3   : > { %p1422_p1 = scmp.ne.s32.totalorder %s1420_s26, %s1421_s6  ;;  %p1427_p10 = scmp.lt.s32.totalorder %s1425_s9, %s1421_s6 }
0x12a5   : > { %v551_v38 = vpop.permute.xlu2 %550  ;;  %p1423_p3 = pnand %p1422_p1, %p1605_p0  ;;  %p1428_p12 = por %p1427_p10, %p1426_p9 }
0x12a6   : > { %553 = vst.msk [vmem:[#allocation4 + $0x2] sm:$0x1] %vm297_vm0, %v551_v38 }
0x12a7   : > { %p1424_p8 = pneg %p1423_p3 }
0x12a8   : > { %923 = vrot.lane.b32.xlu1 %v909_v33, %s1500_s7 }
0x12a9   : > { %p1429_p13 = pnand %p1428_p12, %p1424_p8 }
0x12ad   : > { %v772_v40 = vpop.permute.xlu2 %771 }
0x12ae   : > { %774 = vst.msk [vmem:[#allocation4 + $0x5] sm:$0x1] %vm297_vm0, %v772_v40 }
0x1312   : > { %v918_v43 = vpop.permute.xlu1 %917 }
0x1313   : > { %920 = vst.msk [vmem:[#allocation4 + $0x7] sm:$0x1] %vm297_vm0, %v918_v43 }
0x1314   : > { %921 = vst.msk [vmem:[#allocation2] sm:$0x1] %vm297_vm0, %v918_v43 }
0x131a   : > { %v924_v25 = vpop.permute.xlu1 %923  ;;  %v927_v42 = vld [vmem:[#allocation4] sm:$0xff] }
0x131b   : > { %926 = vst.msk [vmem:[#allocation3] sm:$0x1] %vm297_vm0, %v924_v25  ;;  %v928_v44 = vpack.c.bf16 %v927_v42, %v927_v42 }
0x131d   : > { %1145 = vmatmul.msk.bf16.vlgmr.msra.gmra.mxu0 %vm318_vm1, %v928_v44 }
0x139a   : > { %v961_v46 = vpop.f32.mrf.mxu0 }
0x139b   : > { %v962_v47 = vadd.f32 %v1246_v45, %v961_v46 }
0x139d   : > { %965 = vmax.xlane.f32.xlu2 %v962_v47 }
0x13a2   : > { %v963_v48 = vpop.f32.mrf.mxu0 }
0x1410   : > { %v966_v49 = vpop.xlane.xlu2 %965 }
0x1411   : > { %v967_v50 = vsub.f32 %v962_v47, %v966_v49 }
0x1413   : > { %v968_v52 = vmul.f32 1.442695, %v967_v50 }
0x1415   : > { %1311 = vpow2.f32 %v968_v52 }
0x141b   : > { %v1312_v53 = vpop.eup %1311 }
0x141c   : > { %970 = vadd.xlane.f32.xlu0 %v1312_v53 }
0x148f   : > { %v971_v54 = vpop.xlane.xlu0 %970 }
0x1490   : > { %1313 = vlog2.f32 %v971_v54 }
0x1496   : > { %v1314_v55 = vpop.eup %1313 }
0x1497   : > { %v973_v56 = vmul.f32 0.6931472, %v1314_v55 }
0x1499   : > { %v974_v57 = vsub.f32 %v967_v50, %v973_v56 }
0x149b   : > { %975 = vst [vmem:[%s291_s8] sm:$0xff] %v974_v57 }
0x149c   : > { %1432 = shalt.err (!%p1429_p13)
}
0x149d   : > { %1166 = dma.vmem_to_hbm [thread:$0]  (%p1605_p0), %s991_s24, 128, %s993_s25, %s977_s29  }
0x149e PF: > { %s1004_s16 = sand.u32 1, %s1471_s18   ;;  %p1180_p2 = pnand %p1097_p6, %p1612_p5 }
0x149f   : > { %s1005_s12 = scalar_lea.sflag [#allocation7], %s1004_s16 }
0x14a0   : > { %p1181_p4 = pneg %p1180_p2 }
0x14a2   : > { %1466 = dma.done.wait (%p1181_p4), %s1005_s12, 128  }
0x14a3   : > { %1468 = vsyncadd (%p1181_p4), %s1005_s12, 4294967168  ;;  %s22_s23 = sadd.s32 1, %s1491_s23   ;;  %s1813_s18 = smov %s1475_s19 }
0x14a4   : > { %p19_p7 = scmp.ge.s32.totalorder %s22_s23, 4   ;;  %s1814_s19 = smov %s1479_s20 }
0x14a5   : > { %s1815_s20 = smov %s1610_s28  ;;  %s1816_s21 = smov %s1487_s22 }
0x14a6   : > { %s1817_s22 = smov %s1819_s14  ;;  %21 = sbr.rel (!%p19_p7) target bundleno = 7 (0x7), region = 97 }
0x14ab   :  { %1011 = vsyncpa [#allocation6], 1 }
0x14ac   :  { %1013 = vsyncpa [#allocation6 + $0x1], 1 }
0x14ad   :  { %1014 = vsyncpa [#allocation9], 1 }
0x14ae   :  { %1015 = vsyncpa [#allocation7], 1 }
0x14af   :  { %1017 = vsyncpa [#allocation7 + $0x1], 1 }

</bundles_post_ra>
